<compile_context>
chip_gen: v6e
topology: v6e:2x2x1
jax: 0.10.0
libtpu: 0.0.40
codegen_flags: <defaults>
</compile_context>

<pallas_src>
import math

import jax
import jax.numpy as jnp
from jax.experimental import pallas as pl
from jax.experimental.pallas import tpu as pltpu

B, S, D, H, V = 2, 8, 32, 4, 16     # batch, seq, model dim, heads, vocab
DK = D // H                          # per-head dim
FF = 2 * D                           # MLP hidden size
N_BLOCKS = 2
EPS = 1e-6
NEG_INF = -1e9


# ----------------------------- in-kernel helpers -----------------------------
def _layernorm(x, g, b):
    mu = jnp.mean(x, axis=-1, keepdims=True)
    var = jnp.mean((x - mu) ** 2, axis=-1, keepdims=True)
    return g * (x - mu) * jax.lax.rsqrt(var + EPS) + b


def _softmax(x):
    m = jnp.max(x, axis=-1, keepdims=True)
    e = jnp.exp(x - m)
    return e / jnp.sum(e, axis=-1, keepdims=True)


# ------------------------------- fused Pallas kernel -------------------------------
def fused_forward_kernel(x_ref, bias_ref,
                         wqkv_ref, bqkv_ref, wo_ref,
                         w1_ref, b1_ref, w2_ref, vecs_ref,
                         headv_ref, wout_ref, bout_ref,
                         o_ref):
    x = x_ref[0]          # [S, D]   activations for this batch element
    bias = bias_ref[0]    # [S, S]   additive attention mask (0 or -1e9)
    scale = 1.0 / math.sqrt(DK)

    # Static unroll over transformer blocks; all weights stay VMEM-resident.
    for blk in range(N_BLOCKS):
        wqkv = wqkv_ref[blk]        # [D, 3D]  (wq | wk | wv)
        bqkv = bqkv_ref[blk]        # [1, 3D]
        wo = wo_ref[blk]            # [D, D]
        w1 = w1_ref[blk]            # [D, FF]
        b1 = b1_ref[blk]            # [1, FF]
        w2 = w2_ref[blk]            # [FF, D]
        vec = vecs_ref[blk]         # [6, D]: bo, ln1g, ln1b, ln2g, ln2b, b2
        bo, ln1g, ln1b = vec[0:1], vec[1:2], vec[2:3]
        ln2g, ln2b, b2 = vec[3:4], vec[4:5], vec[5:6]

        # ---- sublayer 1: pre-LN multi-head self-attention + residual ----
        h = _layernorm(x, ln1g, ln1b)
        qkv = jnp.dot(h, wqkv, preferred_element_type=jnp.float32) + bqkv       # [S, 3D]
        q, k, v = qkv[:, :D], qkv[:, D:2 * D], qkv[:, 2 * D:]
        qh = jnp.stack([q[:, i * DK:(i + 1) * DK] for i in range(H)], axis=0)   # [H, S, DK]
        kh = jnp.stack([k[:, i * DK:(i + 1) * DK] for i in range(H)], axis=0)
        vh = jnp.stack([v[:, i * DK:(i + 1) * DK] for i in range(H)], axis=0)
        s = jnp.einsum("hqd,hkd->hqk", qh, kh,
                       preferred_element_type=jnp.float32) * scale              # [H, S, S]
        s = s + bias[None, :, :]                                                # additive mask
        p = _softmax(s)
        ctx = jnp.einsum("hqk,hkd->hqd", p, vh,
                         preferred_element_type=jnp.float32)                    # [H, S, DK]
        attn = jnp.concatenate([ctx[i] for i in range(H)], axis=-1)             # [S, D]
        x = x + jnp.dot(attn, wo, preferred_element_type=jnp.float32) + bo

        # ---- sublayer 2: pre-LN MLP (ReLU) + residual ----
        h2 = _layernorm(x, ln2g, ln2b)
        ff = jnp.maximum(jnp.dot(h2, w1, preferred_element_type=jnp.float32) + b1, 0.0)
        x = x + jnp.dot(ff, w2, preferred_element_type=jnp.float32) + b2

    # ---- final LayerNorm + output projection + log_softmax ----
    hv = headv_ref[...]                                   # [2, D]: lnfg, lnfb
    hf = _layernorm(x, hv[0:1], hv[1:2])
    logits = jnp.dot(hf, wout_ref[...], preferred_element_type=jnp.float32) + bout_ref[...]
    mx = jnp.max(logits, axis=-1, keepdims=True)
    sh = logits - mx
    lse = jnp.log(jnp.sum(jnp.exp(sh), axis=-1, keepdims=True))
    o_ref[0] = sh - lse                                   # log_softmax over vocab
    # TODO(synk): for large V, write a lane-dense [S*V] slab to avoid masked partial stores.


# ------------------------------ pallas_call glue ------------------------------
def _rep_spec(shape):
    # parameter tensors: full extent, same block for every grid step (loaded once)
    return pl.BlockSpec(shape, lambda b: (0,) * len(shape))


def fused_forward(x, bias, pk):
    return pl.pallas_call(
        fused_forward_kernel,
        out_shape=jax.ShapeDtypeStruct((B, S, V), jnp.float32),
        grid=(B,),
        in_specs=[
            pl.BlockSpec((1, S, D), lambda b: (b, 0, 0)),     # activations
            pl.BlockSpec((1, S, S), lambda b: (b, 0, 0)),     # additive mask
            _rep_spec((N_BLOCKS, D, 3 * D)),                  # wqkv
            _rep_spec((N_BLOCKS, 1, 3 * D)),                  # bqkv
            _rep_spec((N_BLOCKS, D, D)),                      # wo
            _rep_spec((N_BLOCKS, D, FF)),                     # w1
            _rep_spec((N_BLOCKS, 1, FF)),                     # b1
            _rep_spec((N_BLOCKS, FF, D)),                     # w2
            _rep_spec((N_BLOCKS, 6, D)),                      # bo/ln1/ln2/b2 vector slab
            _rep_spec((2, D)),                                # final LN gamma/beta
            _rep_spec((D, V)),                                # output linear W
            _rep_spec((1, V)),                                # output linear b
        ],
        out_specs=pl.BlockSpec((1, S, V), lambda b: (b, 0, 0)),
        compiler_params=pltpu.CompilerParams(
            dimension_semantics=("parallel",)),               # one batch per TC on v7x
    )(x, bias, pk["wqkv"], pk["bqkv"], pk["wo"], pk["w1"], pk["b1"], pk["w2"],
      pk["vecs"], pk["headv"], pk["wout"], pk["bout"])


# ------------------------------ params / packing ------------------------------
def positional_encoding(seq_len, d):
    pos = jnp.arange(seq_len, dtype=jnp.float32)[:, None]
    div = jnp.exp(jnp.arange(0, d, 2, dtype=jnp.float32) * (-math.log(10000.0) / d))
    pe = jnp.zeros((seq_len, d), jnp.float32)
    pe = pe.at[:, 0::2].set(jnp.sin(pos * div))
    pe = pe.at[:, 1::2].set(jnp.cos(pos * div))
    return pe


def init_params(key):
    keys = jax.random.split(key, 6 * N_BLOCKS + 2)
    ki = iter(range(len(keys)))

    def dense(shape, scale=0.05):
        return jax.random.normal(keys[next(ki)], shape, jnp.float32) * scale

    params = {"emb": dense((V, D), 0.1)}
    blocks = []
    for _ in range(N_BLOCKS):
        blocks.append({
            "wq": dense((D, D)), "bq": jnp.zeros((1, D), jnp.float32),
            "wk": dense((D, D)), "bk": jnp.zeros((1, D), jnp.float32),
            "wv": dense((D, D)), "bv": jnp.zeros((1, D), jnp.float32),
            "wo": dense((D, D)), "bo": jnp.zeros((1, D), jnp.float32),
            "ln1g": jnp.ones((1, D), jnp.float32), "ln1b": jnp.zeros((1, D), jnp.float32),
            "ln2g": jnp.ones((1, D), jnp.float32), "ln2b": jnp.zeros((1, D), jnp.float32),
            "w1": dense((D, FF)), "b1": jnp.zeros((1, FF), jnp.float32),
            "w2": dense((FF, D)), "b2": jnp.zeros((1, D), jnp.float32),
        })
    params["blocks"] = blocks
    params["lnfg"] = jnp.ones((1, D), jnp.float32)
    params["lnfb"] = jnp.zeros((1, D), jnp.float32)
    params["w_out"] = dense((D, V))
    params["b_out"] = jnp.zeros((1, V), jnp.float32)
    return params


def pack_params(params):
    blocks = params["blocks"]
    return {
        "wqkv": jnp.stack([jnp.concatenate([p["wq"], p["wk"], p["wv"]], axis=1) for p in blocks]),
        "bqkv": jnp.stack([jnp.concatenate([p["bq"], p["bk"], p["bv"]], axis=1) for p in blocks]),
        "wo":   jnp.stack([p["wo"] for p in blocks]),
        "w1":   jnp.stack([p["w1"] for p in blocks]),
        "b1":   jnp.stack([p["b1"] for p in blocks]),
        "w2":   jnp.stack([p["w2"] for p in blocks]),
        "vecs": jnp.stack([jnp.concatenate(
            [p["bo"], p["ln1g"], p["ln1b"], p["ln2g"], p["ln2b"], p["b2"]], axis=0)
            for p in blocks]),
        "headv": jnp.concatenate([params["lnfg"], params["lnfb"]], axis=0),
        "wout": params["w_out"],
        "bout": params["b_out"],
    }


def full_transformer(tokens, mask, params):
    # embedding lookup (gather) + positional encoding kept as plain-JAX glue
    x = params["emb"][tokens] * math.sqrt(D) + positional_encoding(S, D)[None]
    bias = jnp.where(mask == 0.0, NEG_INF, 0.0).astype(jnp.float32)   # additive mask
    return fused_forward(x.astype(jnp.float32), bias, pack_params(params))


# ----------------------------- plain-JAX reference -----------------------------
def reference(tokens, mask, params):
    x = params["emb"][tokens] * math.sqrt(D) + positional_encoding(S, D)[None]
    for p in params["blocks"]:
        h = _layernorm(x, p["ln1g"][0], p["ln1b"][0])
        q = h @ p["wq"] + p["bq"][0]
        k = h @ p["wk"] + p["bk"][0]
        v = h @ p["wv"] + p["bv"][0]
        heads = []
        for hh in range(H):
            lo = hh * DK
            s = jnp.einsum("bqd,bkd->bqk", q[..., lo:lo + DK], k[..., lo:lo + DK]) / math.sqrt(DK)
            s = jnp.where(mask == 0.0, -1e9, s)
            heads.append(jnp.einsum("bqk,bkd->bqd", _softmax(s), v[..., lo:lo + DK]))
        x = x + (jnp.concatenate(heads, -1) @ p["wo"] + p["bo"][0])
        h2 = _layernorm(x, p["ln2g"][0], p["ln2b"][0])
        x = x + (jnp.maximum(h2 @ p["w1"] + p["b1"][0], 0.0) @ p["w2"] + p["b2"][0])
    h = _layernorm(x, params["lnfg"][0], params["lnfb"][0])
    logits = h @ params["w_out"] + params["b_out"][0]
    return jax.nn.log_softmax(logits, axis=-1)


# ------------------------------------ main -------------------------------------
if __name__ == "__main__":
    key = jax.random.PRNGKey(0)
    pkey, tkey = jax.random.split(key)
    params = init_params(pkey)

    tokens = jax.random.randint(tkey, (B, S), 0, V, dtype=jnp.int32)
    causal = jnp.tril(jnp.ones((S, S), jnp.float32))
    mask = jnp.tile(causal[None], (B, 1, 1))          # [B, S, S], 1=attend / 0=masked

    out = full_transformer(tokens, mask, params)
    out = jax.block_until_ready(out)

    ref = reference(tokens, mask, params)
    assert out.shape == (B, S, V)
    assert bool(jnp.allclose(jnp.exp(out).sum(-1), 1.0, atol=1e-3))   # valid log-probs
    assert bool(jnp.allclose(out, ref, atol=1e-4, rtol=1e-4))
    print("KERNEL_OK")
</pallas_src>

<mosaic_0001>
module attributes {stable_mosaic.version = 11 : i64} {
  func.func @fused_forward_kernel(%arg0: i32, %arg1: memref<1x8x32xf32, #tpu.memory_space<vmem>>, %arg2: memref<1x8x8xf32, #tpu.memory_space<vmem>>, %arg3: memref<2x32x96xf32, #tpu.memory_space<vmem>>, %arg4: memref<2x1x96xf32, #tpu.memory_space<vmem>>, %arg5: memref<2x32x32xf32, #tpu.memory_space<vmem>>, %arg6: memref<2x32x64xf32, #tpu.memory_space<vmem>>, %arg7: memref<2x1x64xf32, #tpu.memory_space<vmem>>, %arg8: memref<2x64x32xf32, #tpu.memory_space<vmem>>, %arg9: memref<2x6x32xf32, #tpu.memory_space<vmem>>, %arg10: memref<2x32xf32, #tpu.memory_space<vmem>>, %arg11: memref<32x16xf32, #tpu.memory_space<vmem>>, %arg12: memref<1x16xf32, #tpu.memory_space<vmem>>, %arg13: memref<1x8x16xf32, #tpu.memory_space<vmem>>) attributes {dimension_semantics = [#tpu.dimension_semantics<parallel>], iteration_bounds = array<i64: 2>, scalar_prefetch = 0 : i64, scratch_operands = 0 : i64, tpu.core_type = #tpu.core_type<tc>, window_params = [{transform_indices = @transform_0, window_bounds = array<i64: 1, 8, 32>}, {transform_indices = @transform_1, window_bounds = array<i64: 1, 8, 8>}, {pipeline_mode = #tpu.pipeline_mode<synchronous>, transform_indices = @transform_2, window_bounds = array<i64: 2, 32, 96>}, {pipeline_mode = #tpu.pipeline_mode<synchronous>, transform_indices = @transform_3, window_bounds = array<i64: 2, 1, 96>}, {pipeline_mode = #tpu.pipeline_mode<synchronous>, transform_indices = @transform_4, window_bounds = array<i64: 2, 32, 32>}, {pipeline_mode = #tpu.pipeline_mode<synchronous>, transform_indices = @transform_5, window_bounds = array<i64: 2, 32, 64>}, {pipeline_mode = #tpu.pipeline_mode<synchronous>, transform_indices = @transform_6, window_bounds = array<i64: 2, 1, 64>}, {pipeline_mode = #tpu.pipeline_mode<synchronous>, transform_indices = @transform_7, window_bounds = array<i64: 2, 64, 32>}, {pipeline_mode = #tpu.pipeline_mode<synchronous>, transform_indices = @transform_8, window_bounds = array<i64: 2, 6, 32>}, {pipeline_mode = #tpu.pipeline_mode<synchronous>, transform_indices = @transform_9, window_bounds = array<i64: 2, 32>}, {pipeline_mode = #tpu.pipeline_mode<synchronous>, transform_indices = @transform_10, window_bounds = array<i64: 32, 16>}, {pipeline_mode = #tpu.pipeline_mode<synchronous>, transform_indices = @transform_11, window_bounds = array<i64: 1, 16>}, {transform_indices = @transform_12, window_bounds = array<i64: 1, 8, 16>}]} {
    %c0 = arith.constant 0 : index
    %c0_0 = arith.constant 0 : index
    %c0_1 = arith.constant 0 : index
    %0 = vector.load %arg1[%c0, %c0_0, %c0_1] : memref<1x8x32xf32, #tpu.memory_space<vmem>>, vector<1x8x32xf32>
    %1 = vector.shape_cast %0 : vector<1x8x32xf32> to vector<8x32xf32>
    %c0_2 = arith.constant 0 : index
    %c0_3 = arith.constant 0 : index
    %c0_4 = arith.constant 0 : index
    %2 = vector.load %arg2[%c0_2, %c0_3, %c0_4] : memref<1x8x8xf32, #tpu.memory_space<vmem>>, vector<1x8x8xf32>
    %3 = vector.shape_cast %2 : vector<1x8x8xf32> to vector<8x8xf32>
    %c0_5 = arith.constant 0 : index
    %c0_6 = arith.constant 0 : index
    %c0_7 = arith.constant 0 : index
    %4 = vector.load %arg3[%c0_5, %c0_6, %c0_7] : memref<2x32x96xf32, #tpu.memory_space<vmem>>, vector<1x32x96xf32>
    %5 = vector.shape_cast %4 : vector<1x32x96xf32> to vector<32x96xf32>
    %c0_8 = arith.constant 0 : index
    %c0_9 = arith.constant 0 : index
    %c0_10 = arith.constant 0 : index
    %6 = vector.load %arg4[%c0_8, %c0_9, %c0_10] : memref<2x1x96xf32, #tpu.memory_space<vmem>>, vector<1x1x96xf32>
    %7 = vector.shape_cast %6 : vector<1x1x96xf32> to vector<1x96xf32>
    %c0_11 = arith.constant 0 : index
    %c0_12 = arith.constant 0 : index
    %c0_13 = arith.constant 0 : index
    %8 = vector.load %arg5[%c0_11, %c0_12, %c0_13] : memref<2x32x32xf32, #tpu.memory_space<vmem>>, vector<1x32x32xf32>
    %9 = vector.shape_cast %8 : vector<1x32x32xf32> to vector<32x32xf32>
    %c0_14 = arith.constant 0 : index
    %c0_15 = arith.constant 0 : index
    %c0_16 = arith.constant 0 : index
    %10 = vector.load %arg6[%c0_14, %c0_15, %c0_16] : memref<2x32x64xf32, #tpu.memory_space<vmem>>, vector<1x32x64xf32>
    %11 = vector.shape_cast %10 : vector<1x32x64xf32> to vector<32x64xf32>
    %c0_17 = arith.constant 0 : index
    %c0_18 = arith.constant 0 : index
    %c0_19 = arith.constant 0 : index
    %12 = vector.load %arg7[%c0_17, %c0_18, %c0_19] : memref<2x1x64xf32, #tpu.memory_space<vmem>>, vector<1x1x64xf32>
    %13 = vector.shape_cast %12 : vector<1x1x64xf32> to vector<1x64xf32>
    %c0_20 = arith.constant 0 : index
    %c0_21 = arith.constant 0 : index
    %c0_22 = arith.constant 0 : index
    %14 = vector.load %arg8[%c0_20, %c0_21, %c0_22] : memref<2x64x32xf32, #tpu.memory_space<vmem>>, vector<1x64x32xf32>
    %15 = vector.shape_cast %14 : vector<1x64x32xf32> to vector<64x32xf32>
    %c0_23 = arith.constant 0 : index
    %c0_24 = arith.constant 0 : index
    %c0_25 = arith.constant 0 : index
    %16 = vector.load %arg9[%c0_23, %c0_24, %c0_25] : memref<2x6x32xf32, #tpu.memory_space<vmem>>, vector<1x6x32xf32>
    %17 = vector.shape_cast %16 : vector<1x6x32xf32> to vector<6x32xf32>
    %18 = vector.extract_strided_slice %17 {offsets = [0, 0], sizes = [1, 32], strides = [1, 1]} : vector<6x32xf32> to vector<1x32xf32>
    %19 = vector.extract_strided_slice %17 {offsets = [1, 0], sizes = [1, 32], strides = [1, 1]} : vector<6x32xf32> to vector<1x32xf32>
    %20 = vector.extract_strided_slice %17 {offsets = [2, 0], sizes = [1, 32], strides = [1, 1]} : vector<6x32xf32> to vector<1x32xf32>
    %21 = vector.extract_strided_slice %17 {offsets = [3, 0], sizes = [1, 32], strides = [1, 1]} : vector<6x32xf32> to vector<1x32xf32>
    %22 = vector.extract_strided_slice %17 {offsets = [4, 0], sizes = [1, 32], strides = [1, 1]} : vector<6x32xf32> to vector<1x32xf32>
    %23 = vector.extract_strided_slice %17 {offsets = [5, 0], sizes = [1, 32], strides = [1, 1]} : vector<6x32xf32> to vector<1x32xf32>
    %cst = arith.constant dense<0.000000e+00> : vector<8xf32>
    %24 = vector.multi_reduction <add>, %1, %cst [1] : vector<8x32xf32> to vector<8xf32>
    %25 = vector.shape_cast %24 : vector<8xf32> to vector<8x1xf32>
    %cst_26 = arith.constant 3.200000e+01 : f32
    %26 = vector.broadcast %cst_26 : f32 to vector<8x1xf32>
    %27 = arith.divf %25, %26 : vector<8x1xf32>
    %28 = vector.broadcast %27 : vector<8x1xf32> to vector<8x32xf32>
    %29 = arith.subf %1, %28 : vector<8x32xf32>
    %30 = arith.mulf %29, %29 : vector<8x32xf32>
    %cst_27 = arith.constant dense<0.000000e+00> : vector<8xf32>
    %31 = vector.multi_reduction <add>, %30, %cst_27 [1] : vector<8x32xf32> to vector<8xf32>
    %32 = vector.shape_cast %31 : vector<8xf32> to vector<8x1xf32>
    %cst_28 = arith.constant 3.200000e+01 : f32
    %33 = vector.broadcast %cst_28 : f32 to vector<8x1xf32>
    %34 = arith.divf %32, %33 : vector<8x1xf32>
    %35 = vector.broadcast %27 : vector<8x1xf32> to vector<8x32xf32>
    %36 = arith.subf %1, %35 : vector<8x32xf32>
    %37 = vector.broadcast %19 : vector<1x32xf32> to vector<8x32xf32>
    %38 = arith.mulf %37, %36 : vector<8x32xf32>
    %cst_29 = arith.constant 9.99999997E-7 : f32
    %39 = vector.broadcast %cst_29 : f32 to vector<8x1xf32>
    %40 = arith.addf %34, %39 : vector<8x1xf32>
    %41 = math.rsqrt %40 : vector<8x1xf32>
    %42 = vector.broadcast %41 : vector<8x1xf32> to vector<8x32xf32>
    %43 = arith.mulf %38, %42 : vector<8x32xf32>
    %44 = vector.broadcast %20 : vector<1x32xf32> to vector<8x32xf32>
    %45 = arith.addf %43, %44 : vector<8x32xf32>
    %cst_30 = arith.constant dense<0.000000e+00> : vector<8x96xf32>
    %46 = tpu.matmul %45, %5, %cst_30 {dimension_numbers = #tpu.dot_dimension_numbers<[1], [0], [0], [1], [0, 0, 1, 1], [], []>} : vector<8x32xf32>, vector<32x96xf32>, vector<8x96xf32> -> vector<8x96xf32>
    %47 = vector.broadcast %7 : vector<1x96xf32> to vector<8x96xf32>
    %48 = arith.addf %46, %47 : vector<8x96xf32>
    %49 = vector.extract_strided_slice %48 {offsets = [0, 0], sizes = [8, 32], strides = [1, 1]} : vector<8x96xf32> to vector<8x32xf32>
    %50 = vector.extract_strided_slice %48 {offsets = [0, 32], sizes = [8, 32], strides = [1, 1]} : vector<8x96xf32> to vector<8x32xf32>
    %51 = vector.extract_strided_slice %48 {offsets = [0, 64], sizes = [8, 32], strides = [1, 1]} : vector<8x96xf32> to vector<8x32xf32>
    %52 = vector.extract_strided_slice %49 {offsets = [0, 0], sizes = [8, 8], strides = [1, 1]} : vector<8x32xf32> to vector<8x8xf32>
    %53 = vector.extract_strided_slice %49 {offsets = [0, 8], sizes = [8, 8], strides = [1, 1]} : vector<8x32xf32> to vector<8x8xf32>
    %54 = vector.extract_strided_slice %49 {offsets = [0, 16], sizes = [8, 8], strides = [1, 1]} : vector<8x32xf32> to vector<8x8xf32>
    %55 = vector.extract_strided_slice %49 {offsets = [0, 24], sizes = [8, 8], strides = [1, 1]} : vector<8x32xf32> to vector<8x8xf32>
    %56 = vector.shape_cast %52 : vector<8x8xf32> to vector<1x8x8xf32>
    %57 = vector.shape_cast %53 : vector<8x8xf32> to vector<1x8x8xf32>
    %58 = vector.shape_cast %54 : vector<8x8xf32> to vector<1x8x8xf32>
    %59 = vector.shape_cast %55 : vector<8x8xf32> to vector<1x8x8xf32>
    %60 = tpu.concatenate %56, %57, %58, %59 in 0 : vector<1x8x8xf32>, vector<1x8x8xf32>, vector<1x8x8xf32>, vector<1x8x8xf32> -> vector<4x8x8xf32>
    %61 = vector.extract_strided_slice %50 {offsets = [0, 0], sizes = [8, 8], strides = [1, 1]} : vector<8x32xf32> to vector<8x8xf32>
    %62 = vector.extract_strided_slice %50 {offsets = [0, 8], sizes = [8, 8], strides = [1, 1]} : vector<8x32xf32> to vector<8x8xf32>
    %63 = vector.extract_strided_slice %50 {offsets = [0, 16], sizes = [8, 8], strides = [1, 1]} : vector<8x32xf32> to vector<8x8xf32>
    %64 = vector.extract_strided_slice %50 {offsets = [0, 24], sizes = [8, 8], strides = [1, 1]} : vector<8x32xf32> to vector<8x8xf32>
    %65 = vector.shape_cast %61 : vector<8x8xf32> to vector<1x8x8xf32>
    %66 = vector.shape_cast %62 : vector<8x8xf32> to vector<1x8x8xf32>
    %67 = vector.shape_cast %63 : vector<8x8xf32> to vector<1x8x8xf32>
    %68 = vector.shape_cast %64 : vector<8x8xf32> to vector<1x8x8xf32>
    %69 = tpu.concatenate %65, %66, %67, %68 in 0 : vector<1x8x8xf32>, vector<1x8x8xf32>, vector<1x8x8xf32>, vector<1x8x8xf32> -> vector<4x8x8xf32>
    %70 = vector.extract_strided_slice %51 {offsets = [0, 0], sizes = [8, 8], strides = [1, 1]} : vector<8x32xf32> to vector<8x8xf32>
    %71 = vector.extract_strided_slice %51 {offsets = [0, 8], sizes = [8, 8], strides = [1, 1]} : vector<8x32xf32> to vector<8x8xf32>
    %72 = vector.extract_strided_slice %51 {offsets = [0, 16], sizes = [8, 8], strides = [1, 1]} : vector<8x32xf32> to vector<8x8xf32>
    %73 = vector.extract_strided_slice %51 {offsets = [0, 24], sizes = [8, 8], strides = [1, 1]} : vector<8x32xf32> to vector<8x8xf32>
    %74 = vector.shape_cast %70 : vector<8x8xf32> to vector<1x8x8xf32>
    %75 = vector.shape_cast %71 : vector<8x8xf32> to vector<1x8x8xf32>
    %76 = vector.shape_cast %72 : vector<8x8xf32> to vector<1x8x8xf32>
    %77 = vector.shape_cast %73 : vector<8x8xf32> to vector<1x8x8xf32>
    %78 = tpu.concatenate %74, %75, %76, %77 in 0 : vector<1x8x8xf32>, vector<1x8x8xf32>, vector<1x8x8xf32>, vector<1x8x8xf32> -> vector<4x8x8xf32>
    "tpu.trace_start"() <{level = 10 : i32, message = "hqd,hkd->hqk"}> : () -> ()
    %cst_31 = arith.constant dense<0.000000e+00> : vector<4x8x8xf32>
    %79 = tpu.matmul %60, %69, %cst_31 {dimension_numbers = #tpu.dot_dimension_numbers<[2], [2], [1], [1], [0, 0, 0, 1, 1, 1], [0], [0]>} : vector<4x8x8xf32>, vector<4x8x8xf32>, vector<4x8x8xf32> -> vector<4x8x8xf32>
    "tpu.trace_stop"() : () -> ()
    %cst_32 = arith.constant 0.353553385 : f32
    %80 = vector.broadcast %cst_32 : f32 to vector<4x8x8xf32>
    %81 = arith.mulf %79, %80 : vector<4x8x8xf32>
    %82 = vector.shape_cast %3 : vector<8x8xf32> to vector<1x8x8xf32>
    %83 = vector.broadcast %82 : vector<1x8x8xf32> to vector<4x8x8xf32>
    %84 = arith.addf %81, %83 : vector<4x8x8xf32>
    %cst_33 = arith.constant dense<0xFF800000> : vector<4x8xf32>
    %85 = vector.multi_reduction <maximumf>, %84, %cst_33 [2] : vector<4x8x8xf32> to vector<4x8xf32>
    %86 = vector.shape_cast %85 : vector<4x8xf32> to vector<4x8x1xf32>
    %87 = vector.broadcast %86 : vector<4x8x1xf32> to vector<4x8x8xf32>
    %88 = arith.subf %84, %87 : vector<4x8x8xf32>
    %89 = math.exp %88 : vector<4x8x8xf32>
    %cst_34 = arith.constant dense<0.000000e+00> : vector<4x8xf32>
    %90 = vector.multi_reduction <add>, %89, %cst_34 [2] : vector<4x8x8xf32> to vector<4x8xf32>
    %91 = vector.shape_cast %90 : vector<4x8xf32> to vector<4x8x1xf32>
    %92 = vector.broadcast %91 : vector<4x8x1xf32> to vector<4x8x8xf32>
    %93 = arith.divf %89, %92 : vector<4x8x8xf32>
    "tpu.trace_start"() <{level = 10 : i32, message = "hqk,hkd->hqd"}> : () -> ()
    %cst_35 = arith.constant dense<0.000000e+00> : vector<4x8x8xf32>
    %94 = tpu.matmul %93, %78, %cst_35 {dimension_numbers = #tpu.dot_dimension_numbers<[2], [1], [1], [2], [0, 0, 0, 1, 1, 2], [0], [0]>} : vector<4x8x8xf32>, vector<4x8x8xf32>, vector<4x8x8xf32> -> vector<4x8x8xf32>
    "tpu.trace_stop"() : () -> ()
    %95 = vector.extract_strided_slice %94 {offsets = [0, 0, 0], sizes = [1, 8, 8], strides = [1, 1, 1]} : vector<4x8x8xf32> to vector<1x8x8xf32>
    %96 = vector.shape_cast %95 : vector<1x8x8xf32> to vector<8x8xf32>
    %97 = vector.extract_strided_slice %94 {offsets = [1, 0, 0], sizes = [1, 8, 8], strides = [1, 1, 1]} : vector<4x8x8xf32> to vector<1x8x8xf32>
    %98 = vector.shape_cast %97 : vector<1x8x8xf32> to vector<8x8xf32>
    %99 = vector.extract_strided_slice %94 {offsets = [2, 0, 0], sizes = [1, 8, 8], strides = [1, 1, 1]} : vector<4x8x8xf32> to vector<1x8x8xf32>
    %100 = vector.shape_cast %99 : vector<1x8x8xf32> to vector<8x8xf32>
    %101 = vector.extract_strided_slice %94 {offsets = [3, 0, 0], sizes = [1, 8, 8], strides = [1, 1, 1]} : vector<4x8x8xf32> to vector<1x8x8xf32>
    %102 = vector.shape_cast %101 : vector<1x8x8xf32> to vector<8x8xf32>
    %103 = tpu.concatenate %96, %98, %100, %102 in 1 : vector<8x8xf32>, vector<8x8xf32>, vector<8x8xf32>, vector<8x8xf32> -> vector<8x32xf32>
    %cst_36 = arith.constant dense<0.000000e+00> : vector<8x32xf32>
    %104 = tpu.matmul %103, %9, %cst_36 {dimension_numbers = #tpu.dot_dimension_numbers<[1], [0], [0], [1], [0, 0, 1, 1], [], []>} : vector<8x32xf32>, vector<32x32xf32>, vector<8x32xf32> -> vector<8x32xf32>
    %105 = arith.addf %1, %104 : vector<8x32xf32>
    %106 = vector.broadcast %18 : vector<1x32xf32> to vector<8x32xf32>
    %107 = arith.addf %105, %106 : vector<8x32xf32>
    %cst_37 = arith.constant dense<0.000000e+00> : vector<8xf32>
    %108 = vector.multi_reduction <add>, %107, %cst_37 [1] : vector<8x32xf32> to vector<8xf32>
    %109 = vector.shape_cast %108 : vector<8xf32> to vector<8x1xf32>
    %cst_38 = arith.constant 3.200000e+01 : f32
    %110 = vector.broadcast %cst_38 : f32 to vector<8x1xf32>
    %111 = arith.divf %109, %110 : vector<8x1xf32>
    %112 = vector.broadcast %111 : vector<8x1xf32> to vector<8x32xf32>
    %113 = arith.subf %107, %112 : vector<8x32xf32>
    %114 = arith.mulf %113, %113 : vector<8x32xf32>
    %cst_39 = arith.constant dense<0.000000e+00> : vector<8xf32>
    %115 = vector.multi_reduction <add>, %114, %cst_39 [1] : vector<8x32xf32> to vector<8xf32>
    %116 = vector.shape_cast %115 : vector<8xf32> to vector<8x1xf32>
    %cst_40 = arith.constant 3.200000e+01 : f32
    %117 = vector.broadcast %cst_40 : f32 to vector<8x1xf32>
    %118 = arith.divf %116, %117 : vector<8x1xf32>
    %119 = vector.broadcast %111 : vector<8x1xf32> to vector<8x32xf32>
    %120 = arith.subf %107, %119 : vector<8x32xf32>
    %121 = vector.broadcast %21 : vector<1x32xf32> to vector<8x32xf32>
    %122 = arith.mulf %121, %120 : vector<8x32xf32>
    %cst_41 = arith.constant 9.99999997E-7 : f32
    %123 = vector.broadcast %cst_41 : f32 to vector<8x1xf32>
    %124 = arith.addf %118, %123 : vector<8x1xf32>
    %125 = math.rsqrt %124 : vector<8x1xf32>
    %126 = vector.broadcast %125 : vector<8x1xf32> to vector<8x32xf32>
    %127 = arith.mulf %122, %126 : vector<8x32xf32>
    %128 = vector.broadcast %22 : vector<1x32xf32> to vector<8x32xf32>
    %129 = arith.addf %127, %128 : vector<8x32xf32>
    %cst_42 = arith.constant dense<0.000000e+00> : vector<8x64xf32>
    %130 = tpu.matmul %129, %11, %cst_42 {dimension_numbers = #tpu.dot_dimension_numbers<[1], [0], [0], [1], [0, 0, 1, 1], [], []>} : vector<8x32xf32>, vector<32x64xf32>, vector<8x64xf32> -> vector<8x64xf32>
    %131 = vector.broadcast %13 : vector<1x64xf32> to vector<8x64xf32>
    %132 = arith.addf %130, %131 : vector<8x64xf32>
    %cst_43 = arith.constant 0.000000e+00 : f32
    %133 = vector.broadcast %cst_43 : f32 to vector<8x64xf32>
    %134 = arith.maximumf %132, %133 : vector<8x64xf32>
    %cst_44 = arith.constant dense<0.000000e+00> : vector<8x32xf32>
    %135 = tpu.matmul %134, %15, %cst_44 {dimension_numbers = #tpu.dot_dimension_numbers<[1], [0], [0], [1], [0, 0, 1, 1], [], []>} : vector<8x64xf32>, vector<64x32xf32>, vector<8x32xf32> -> vector<8x32xf32>
    %136 = arith.addf %107, %135 : vector<8x32xf32>
    %137 = vector.broadcast %23 : vector<1x32xf32> to vector<8x32xf32>
    %138 = arith.addf %136, %137 : vector<8x32xf32>
    %c1 = arith.constant 1 : index
    %c0_45 = arith.constant 0 : index
    %c0_46 = arith.constant 0 : index
    %139 = vector.load %arg3[%c1, %c0_45, %c0_46] : memref<2x32x96xf32, #tpu.memory_space<vmem>>, vector<1x32x96xf32>
    %140 = vector.shape_cast %139 : vector<1x32x96xf32> to vector<32x96xf32>
    %c1_47 = arith.constant 1 : index
    %c0_48 = arith.constant 0 : index
    %c0_49 = arith.constant 0 : index
    %141 = vector.load %arg4[%c1_47, %c0_48, %c0_49] : memref<2x1x96xf32, #tpu.memory_space<vmem>>, vector<1x1x96xf32>
    %142 = vector.shape_cast %141 : vector<1x1x96xf32> to vector<1x96xf32>
    %c1_50 = arith.constant 1 : index
    %c0_51 = arith.constant 0 : index
    %c0_52 = arith.constant 0 : index
    %143 = vector.load %arg5[%c1_50, %c0_51, %c0_52] : memref<2x32x32xf32, #tpu.memory_space<vmem>>, vector<1x32x32xf32>
    %144 = vector.shape_cast %143 : vector<1x32x32xf32> to vector<32x32xf32>
    %c1_53 = arith.constant 1 : index
    %c0_54 = arith.constant 0 : index
    %c0_55 = arith.constant 0 : index
    %145 = vector.load %arg6[%c1_53, %c0_54, %c0_55] : memref<2x32x64xf32, #tpu.memory_space<vmem>>, vector<1x32x64xf32>
    %146 = vector.shape_cast %145 : vector<1x32x64xf32> to vector<32x64xf32>
    %c1_56 = arith.constant 1 : index
    %c0_57 = arith.constant 0 : index
    %c0_58 = arith.constant 0 : index
    %147 = vector.load %arg7[%c1_56, %c0_57, %c0_58] : memref<2x1x64xf32, #tpu.memory_space<vmem>>, vector<1x1x64xf32>
    %148 = vector.shape_cast %147 : vector<1x1x64xf32> to vector<1x64xf32>
    %c1_59 = arith.constant 1 : index
    %c0_60 = arith.constant 0 : index
    %c0_61 = arith.constant 0 : index
    %149 = vector.load %arg8[%c1_59, %c0_60, %c0_61] : memref<2x64x32xf32, #tpu.memory_space<vmem>>, vector<1x64x32xf32>
    %150 = vector.shape_cast %149 : vector<1x64x32xf32> to vector<64x32xf32>
    %c1_62 = arith.constant 1 : index
    %c0_63 = arith.constant 0 : index
    %c0_64 = arith.constant 0 : index
    %151 = vector.load %arg9[%c1_62, %c0_63, %c0_64] : memref<2x6x32xf32, #tpu.memory_space<vmem>>, vector<1x6x32xf32>
    %152 = vector.shape_cast %151 : vector<1x6x32xf32> to vector<6x32xf32>
    %153 = vector.extract_strided_slice %152 {offsets = [0, 0], sizes = [1, 32], strides = [1, 1]} : vector<6x32xf32> to vector<1x32xf32>
    %154 = vector.extract_strided_slice %152 {offsets = [1, 0], sizes = [1, 32], strides = [1, 1]} : vector<6x32xf32> to vector<1x32xf32>
    %155 = vector.extract_strided_slice %152 {offsets = [2, 0], sizes = [1, 32], strides = [1, 1]} : vector<6x32xf32> to vector<1x32xf32>
    %156 = vector.extract_strided_slice %152 {offsets = [3, 0], sizes = [1, 32], strides = [1, 1]} : vector<6x32xf32> to vector<1x32xf32>
    %157 = vector.extract_strided_slice %152 {offsets = [4, 0], sizes = [1, 32], strides = [1, 1]} : vector<6x32xf32> to vector<1x32xf32>
    %158 = vector.extract_strided_slice %152 {offsets = [5, 0], sizes = [1, 32], strides = [1, 1]} : vector<6x32xf32> to vector<1x32xf32>
    %cst_65 = arith.constant dense<0.000000e+00> : vector<8xf32>
    %159 = vector.multi_reduction <add>, %138, %cst_65 [1] : vector<8x32xf32> to vector<8xf32>
    %160 = vector.shape_cast %159 : vector<8xf32> to vector<8x1xf32>
    %cst_66 = arith.constant 3.200000e+01 : f32
    %161 = vector.broadcast %cst_66 : f32 to vector<8x1xf32>
    %162 = arith.divf %160, %161 : vector<8x1xf32>
    %163 = vector.broadcast %162 : vector<8x1xf32> to vector<8x32xf32>
    %164 = arith.subf %138, %163 : vector<8x32xf32>
    %165 = arith.mulf %164, %164 : vector<8x32xf32>
    %cst_67 = arith.constant dense<0.000000e+00> : vector<8xf32>
    %166 = vector.multi_reduction <add>, %165, %cst_67 [1] : vector<8x32xf32> to vector<8xf32>
    %167 = vector.shape_cast %166 : vector<8xf32> to vector<8x1xf32>
    %cst_68 = arith.constant 3.200000e+01 : f32
    %168 = vector.broadcast %cst_68 : f32 to vector<8x1xf32>
    %169 = arith.divf %167, %168 : vector<8x1xf32>
    %170 = vector.broadcast %162 : vector<8x1xf32> to vector<8x32xf32>
    %171 = arith.subf %138, %170 : vector<8x32xf32>
    %172 = vector.broadcast %154 : vector<1x32xf32> to vector<8x32xf32>
    %173 = arith.mulf %172, %171 : vector<8x32xf32>
    %cst_69 = arith.constant 9.99999997E-7 : f32
    %174 = vector.broadcast %cst_69 : f32 to vector<8x1xf32>
    %175 = arith.addf %169, %174 : vector<8x1xf32>
    %176 = math.rsqrt %175 : vector<8x1xf32>
    %177 = vector.broadcast %176 : vector<8x1xf32> to vector<8x32xf32>
    %178 = arith.mulf %173, %177 : vector<8x32xf32>
    %179 = vector.broadcast %155 : vector<1x32xf32> to vector<8x32xf32>
    %180 = arith.addf %178, %179 : vector<8x32xf32>
    %cst_70 = arith.constant dense<0.000000e+00> : vector<8x96xf32>
    %181 = tpu.matmul %180, %140, %cst_70 {dimension_numbers = #tpu.dot_dimension_numbers<[1], [0], [0], [1], [0, 0, 1, 1], [], []>} : vector<8x32xf32>, vector<32x96xf32>, vector<8x96xf32> -> vector<8x96xf32>
    %182 = vector.broadcast %142 : vector<1x96xf32> to vector<8x96xf32>
    %183 = arith.addf %181, %182 : vector<8x96xf32>
    %184 = vector.extract_strided_slice %183 {offsets = [0, 0], sizes = [8, 32], strides = [1, 1]} : vector<8x96xf32> to vector<8x32xf32>
    %185 = vector.extract_strided_slice %183 {offsets = [0, 32], sizes = [8, 32], strides = [1, 1]} : vector<8x96xf32> to vector<8x32xf32>
    %186 = vector.extract_strided_slice %183 {offsets = [0, 64], sizes = [8, 32], strides = [1, 1]} : vector<8x96xf32> to vector<8x32xf32>
    %187 = vector.extract_strided_slice %184 {offsets = [0, 0], sizes = [8, 8], strides = [1, 1]} : vector<8x32xf32> to vector<8x8xf32>
    %188 = vector.extract_strided_slice %184 {offsets = [0, 8], sizes = [8, 8], strides = [1, 1]} : vector<8x32xf32> to vector<8x8xf32>
    %189 = vector.extract_strided_slice %184 {offsets = [0, 16], sizes = [8, 8], strides = [1, 1]} : vector<8x32xf32> to vector<8x8xf32>
    %190 = vector.extract_strided_slice %184 {offsets = [0, 24], sizes = [8, 8], strides = [1, 1]} : vector<8x32xf32> to vector<8x8xf32>
    %191 = vector.shape_cast %187 : vector<8x8xf32> to vector<1x8x8xf32>
    %192 = vector.shape_cast %188 : vector<8x8xf32> to vector<1x8x8xf32>
    %193 = vector.shape_cast %189 : vector<8x8xf32> to vector<1x8x8xf32>
    %194 = vector.shape_cast %190 : vector<8x8xf32> to vector<1x8x8xf32>
    %195 = tpu.concatenate %191, %192, %193, %194 in 0 : vector<1x8x8xf32>, vector<1x8x8xf32>, vector<1x8x8xf32>, vector<1x8x8xf32> -> vector<4x8x8xf32>
    %196 = vector.extract_strided_slice %185 {offsets = [0, 0], sizes = [8, 8], strides = [1, 1]} : vector<8x32xf32> to vector<8x8xf32>
    %197 = vector.extract_strided_slice %185 {offsets = [0, 8], sizes = [8, 8], strides = [1, 1]} : vector<8x32xf32> to vector<8x8xf32>
    %198 = vector.extract_strided_slice %185 {offsets = [0, 16], sizes = [8, 8], strides = [1, 1]} : vector<8x32xf32> to vector<8x8xf32>
    %199 = vector.extract_strided_slice %185 {offsets = [0, 24], sizes = [8, 8], strides = [1, 1]} : vector<8x32xf32> to vector<8x8xf32>
    %200 = vector.shape_cast %196 : vector<8x8xf32> to vector<1x8x8xf32>
    %201 = vector.shape_cast %197 : vector<8x8xf32> to vector<1x8x8xf32>
    %202 = vector.shape_cast %198 : vector<8x8xf32> to vector<1x8x8xf32>
    %203 = vector.shape_cast %199 : vector<8x8xf32> to vector<1x8x8xf32>
    %204 = tpu.concatenate %200, %201, %202, %203 in 0 : vector<1x8x8xf32>, vector<1x8x8xf32>, vector<1x8x8xf32>, vector<1x8x8xf32> -> vector<4x8x8xf32>
    %205 = vector.extract_strided_slice %186 {offsets = [0, 0], sizes = [8, 8], strides = [1, 1]} : vector<8x32xf32> to vector<8x8xf32>
    %206 = vector.extract_strided_slice %186 {offsets = [0, 8], sizes = [8, 8], strides = [1, 1]} : vector<8x32xf32> to vector<8x8xf32>
    %207 = vector.extract_strided_slice %186 {offsets = [0, 16], sizes = [8, 8], strides = [1, 1]} : vector<8x32xf32> to vector<8x8xf32>
    %208 = vector.extract_strided_slice %186 {offsets = [0, 24], sizes = [8, 8], strides = [1, 1]} : vector<8x32xf32> to vector<8x8xf32>
    %209 = vector.shape_cast %205 : vector<8x8xf32> to vector<1x8x8xf32>
    %210 = vector.shape_cast %206 : vector<8x8xf32> to vector<1x8x8xf32>
    %211 = vector.shape_cast %207 : vector<8x8xf32> to vector<1x8x8xf32>
    %212 = vector.shape_cast %208 : vector<8x8xf32> to vector<1x8x8xf32>
    %213 = tpu.concatenate %209, %210, %211, %212 in 0 : vector<1x8x8xf32>, vector<1x8x8xf32>, vector<1x8x8xf32>, vector<1x8x8xf32> -> vector<4x8x8xf32>
    "tpu.trace_start"() <{level = 10 : i32, message = "hqd,hkd->hqk"}> : () -> ()
    %cst_71 = arith.constant dense<0.000000e+00> : vector<4x8x8xf32>
    %214 = tpu.matmul %195, %204, %cst_71 {dimension_numbers = #tpu.dot_dimension_numbers<[2], [2], [1], [1], [0, 0, 0, 1, 1, 1], [0], [0]>} : vector<4x8x8xf32>, vector<4x8x8xf32>, vector<4x8x8xf32> -> vector<4x8x8xf32>
    "tpu.trace_stop"() : () -> ()
    %cst_72 = arith.constant 0.353553385 : f32
    %215 = vector.broadcast %cst_72 : f32 to vector<4x8x8xf32>
    %216 = arith.mulf %214, %215 : vector<4x8x8xf32>
    %217 = vector.shape_cast %3 : vector<8x8xf32> to vector<1x8x8xf32>
    %218 = vector.broadcast %217 : vector<1x8x8xf32> to vector<4x8x8xf32>
    %219 = arith.addf %216, %218 : vector<4x8x8xf32>
    %cst_73 = arith.constant dense<0xFF800000> : vector<4x8xf32>
    %220 = vector.multi_reduction <maximumf>, %219, %cst_73 [2] : vector<4x8x8xf32> to vector<4x8xf32>
    %221 = vector.shape_cast %220 : vector<4x8xf32> to vector<4x8x1xf32>
    %222 = vector.broadcast %221 : vector<4x8x1xf32> to vector<4x8x8xf32>
    %223 = arith.subf %219, %222 : vector<4x8x8xf32>
    %224 = math.exp %223 : vector<4x8x8xf32>
    %cst_74 = arith.constant dense<0.000000e+00> : vector<4x8xf32>
    %225 = vector.multi_reduction <add>, %224, %cst_74 [2] : vector<4x8x8xf32> to vector<4x8xf32>
    %226 = vector.shape_cast %225 : vector<4x8xf32> to vector<4x8x1xf32>
    %227 = vector.broadcast %226 : vector<4x8x1xf32> to vector<4x8x8xf32>
    %228 = arith.divf %224, %227 : vector<4x8x8xf32>
    "tpu.trace_start"() <{level = 10 : i32, message = "hqk,hkd->hqd"}> : () -> ()
    %cst_75 = arith.constant dense<0.000000e+00> : vector<4x8x8xf32>
    %229 = tpu.matmul %228, %213, %cst_75 {dimension_numbers = #tpu.dot_dimension_numbers<[2], [1], [1], [2], [0, 0, 0, 1, 1, 2], [0], [0]>} : vector<4x8x8xf32>, vector<4x8x8xf32>, vector<4x8x8xf32> -> vector<4x8x8xf32>
    "tpu.trace_stop"() : () -> ()
    %230 = vector.extract_strided_slice %229 {offsets = [0, 0, 0], sizes = [1, 8, 8], strides = [1, 1, 1]} : vector<4x8x8xf32> to vector<1x8x8xf32>
    %231 = vector.shape_cast %230 : vector<1x8x8xf32> to vector<8x8xf32>
    %232 = vector.extract_strided_slice %229 {offsets = [1, 0, 0], sizes = [1, 8, 8], strides = [1, 1, 1]} : vector<4x8x8xf32> to vector<1x8x8xf32>
    %233 = vector.shape_cast %232 : vector<1x8x8xf32> to vector<8x8xf32>
    %234 = vector.extract_strided_slice %229 {offsets = [2, 0, 0], sizes = [1, 8, 8], strides = [1, 1, 1]} : vector<4x8x8xf32> to vector<1x8x8xf32>
    %235 = vector.shape_cast %234 : vector<1x8x8xf32> to vector<8x8xf32>
    %236 = vector.extract_strided_slice %229 {offsets = [3, 0, 0], sizes = [1, 8, 8], strides = [1, 1, 1]} : vector<4x8x8xf32> to vector<1x8x8xf32>
    %237 = vector.shape_cast %236 : vector<1x8x8xf32> to vector<8x8xf32>
    %238 = tpu.concatenate %231, %233, %235, %237 in 1 : vector<8x8xf32>, vector<8x8xf32>, vector<8x8xf32>, vector<8x8xf32> -> vector<8x32xf32>
    %cst_76 = arith.constant dense<0.000000e+00> : vector<8x32xf32>
    %239 = tpu.matmul %238, %144, %cst_76 {dimension_numbers = #tpu.dot_dimension_numbers<[1], [0], [0], [1], [0, 0, 1, 1], [], []>} : vector<8x32xf32>, vector<32x32xf32>, vector<8x32xf32> -> vector<8x32xf32>
    %240 = arith.addf %138, %239 : vector<8x32xf32>
    %241 = vector.broadcast %153 : vector<1x32xf32> to vector<8x32xf32>
    %242 = arith.addf %240, %241 : vector<8x32xf32>
    %cst_77 = arith.constant dense<0.000000e+00> : vector<8xf32>
    %243 = vector.multi_reduction <add>, %242, %cst_77 [1] : vector<8x32xf32> to vector<8xf32>
    %244 = vector.shape_cast %243 : vector<8xf32> to vector<8x1xf32>
    %cst_78 = arith.constant 3.200000e+01 : f32
    %245 = vector.broadcast %cst_78 : f32 to vector<8x1xf32>
    %246 = arith.divf %244, %245 : vector<8x1xf32>
    %247 = vector.broadcast %246 : vector<8x1xf32> to vector<8x32xf32>
    %248 = arith.subf %242, %247 : vector<8x32xf32>
    %249 = arith.mulf %248, %248 : vector<8x32xf32>
    %cst_79 = arith.constant dense<0.000000e+00> : vector<8xf32>
    %250 = vector.multi_reduction <add>, %249, %cst_79 [1] : vector<8x32xf32> to vector<8xf32>
    %251 = vector.shape_cast %250 : vector<8xf32> to vector<8x1xf32>
    %cst_80 = arith.constant 3.200000e+01 : f32
    %252 = vector.broadcast %cst_80 : f32 to vector<8x1xf32>
    %253 = arith.divf %251, %252 : vector<8x1xf32>
    %254 = vector.broadcast %246 : vector<8x1xf32> to vector<8x32xf32>
    %255 = arith.subf %242, %254 : vector<8x32xf32>
    %256 = vector.broadcast %156 : vector<1x32xf32> to vector<8x32xf32>
    %257 = arith.mulf %256, %255 : vector<8x32xf32>
    %cst_81 = arith.constant 9.99999997E-7 : f32
    %258 = vector.broadcast %cst_81 : f32 to vector<8x1xf32>
    %259 = arith.addf %253, %258 : vector<8x1xf32>
    %260 = math.rsqrt %259 : vector<8x1xf32>
    %261 = vector.broadcast %260 : vector<8x1xf32> to vector<8x32xf32>
    %262 = arith.mulf %257, %261 : vector<8x32xf32>
    %263 = vector.broadcast %157 : vector<1x32xf32> to vector<8x32xf32>
    %264 = arith.addf %262, %263 : vector<8x32xf32>
    %cst_82 = arith.constant dense<0.000000e+00> : vector<8x64xf32>
    %265 = tpu.matmul %264, %146, %cst_82 {dimension_numbers = #tpu.dot_dimension_numbers<[1], [0], [0], [1], [0, 0, 1, 1], [], []>} : vector<8x32xf32>, vector<32x64xf32>, vector<8x64xf32> -> vector<8x64xf32>
    %266 = vector.broadcast %148 : vector<1x64xf32> to vector<8x64xf32>
    %267 = arith.addf %265, %266 : vector<8x64xf32>
    %cst_83 = arith.constant 0.000000e+00 : f32
    %268 = vector.broadcast %cst_83 : f32 to vector<8x64xf32>
    %269 = arith.maximumf %267, %268 : vector<8x64xf32>
    %cst_84 = arith.constant dense<0.000000e+00> : vector<8x32xf32>
    %270 = tpu.matmul %269, %150, %cst_84 {dimension_numbers = #tpu.dot_dimension_numbers<[1], [0], [0], [1], [0, 0, 1, 1], [], []>} : vector<8x64xf32>, vector<64x32xf32>, vector<8x32xf32> -> vector<8x32xf32>
    %271 = arith.addf %242, %270 : vector<8x32xf32>
    %272 = vector.broadcast %158 : vector<1x32xf32> to vector<8x32xf32>
    %273 = arith.addf %271, %272 : vector<8x32xf32>
    %c0_85 = arith.constant 0 : index
    %c0_86 = arith.constant 0 : index
    %274 = vector.load %arg10[%c0_85, %c0_86] : memref<2x32xf32, #tpu.memory_space<vmem>>, vector<2x32xf32>
    %275 = vector.extract_strided_slice %274 {offsets = [0, 0], sizes = [1, 32], strides = [1, 1]} : vector<2x32xf32> to vector<1x32xf32>
    %276 = vector.extract_strided_slice %274 {offsets = [1, 0], sizes = [1, 32], strides = [1, 1]} : vector<2x32xf32> to vector<1x32xf32>
    %cst_87 = arith.constant dense<0.000000e+00> : vector<8xf32>
    %277 = vector.multi_reduction <add>, %273, %cst_87 [1] : vector<8x32xf32> to vector<8xf32>
    %278 = vector.shape_cast %277 : vector<8xf32> to vector<8x1xf32>
    %cst_88 = arith.constant 3.200000e+01 : f32
    %279 = vector.broadcast %cst_88 : f32 to vector<8x1xf32>
    %280 = arith.divf %278, %279 : vector<8x1xf32>
    %281 = vector.broadcast %280 : vector<8x1xf32> to vector<8x32xf32>
    %282 = arith.subf %273, %281 : vector<8x32xf32>
    %283 = arith.mulf %282, %282 : vector<8x32xf32>
    %cst_89 = arith.constant dense<0.000000e+00> : vector<8xf32>
    %284 = vector.multi_reduction <add>, %283, %cst_89 [1] : vector<8x32xf32> to vector<8xf32>
    %285 = vector.shape_cast %284 : vector<8xf32> to vector<8x1xf32>
    %cst_90 = arith.constant 3.200000e+01 : f32
    %286 = vector.broadcast %cst_90 : f32 to vector<8x1xf32>
    %287 = arith.divf %285, %286 : vector<8x1xf32>
    %288 = vector.broadcast %280 : vector<8x1xf32> to vector<8x32xf32>
    %289 = arith.subf %273, %288 : vector<8x32xf32>
    %290 = vector.broadcast %275 : vector<1x32xf32> to vector<8x32xf32>
    %291 = arith.mulf %290, %289 : vector<8x32xf32>
    %cst_91 = arith.constant 9.99999997E-7 : f32
    %292 = vector.broadcast %cst_91 : f32 to vector<8x1xf32>
    %293 = arith.addf %287, %292 : vector<8x1xf32>
    %294 = math.rsqrt %293 : vector<8x1xf32>
    %295 = vector.broadcast %294 : vector<8x1xf32> to vector<8x32xf32>
    %296 = arith.mulf %291, %295 : vector<8x32xf32>
    %297 = vector.broadcast %276 : vector<1x32xf32> to vector<8x32xf32>
    %298 = arith.addf %296, %297 : vector<8x32xf32>
    %c0_92 = arith.constant 0 : index
    %c0_93 = arith.constant 0 : index
    %299 = vector.load %arg11[%c0_92, %c0_93] : memref<32x16xf32, #tpu.memory_space<vmem>>, vector<32x16xf32>
    %cst_94 = arith.constant dense<0.000000e+00> : vector<8x16xf32>
    %300 = tpu.matmul %298, %299, %cst_94 {dimension_numbers = #tpu.dot_dimension_numbers<[1], [0], [0], [1], [0, 0, 1, 1], [], []>} : vector<8x32xf32>, vector<32x16xf32>, vector<8x16xf32> -> vector<8x16xf32>
    %c0_95 = arith.constant 0 : index
    %c0_96 = arith.constant 0 : index
    %301 = vector.load %arg12[%c0_95, %c0_96] : memref<1x16xf32, #tpu.memory_space<vmem>>, vector<1x16xf32>
    %302 = vector.broadcast %301 : vector<1x16xf32> to vector<8x16xf32>
    %303 = arith.addf %300, %302 : vector<8x16xf32>
    %cst_97 = arith.constant dense<0xFF800000> : vector<8xf32>
    %304 = vector.multi_reduction <maximumf>, %303, %cst_97 [1] : vector<8x16xf32> to vector<8xf32>
    %305 = vector.shape_cast %304 : vector<8xf32> to vector<8x1xf32>
    %306 = vector.broadcast %305 : vector<8x1xf32> to vector<8x16xf32>
    %307 = arith.subf %303, %306 : vector<8x16xf32>
    %308 = math.exp %307 : vector<8x16xf32>
    %cst_98 = arith.constant dense<0.000000e+00> : vector<8xf32>
    %309 = vector.multi_reduction <add>, %308, %cst_98 [1] : vector<8x16xf32> to vector<8xf32>
    %310 = vector.shape_cast %309 : vector<8xf32> to vector<8x1xf32>
    %311 = math.log %310 : vector<8x1xf32>
    %312 = vector.broadcast %311 : vector<8x1xf32> to vector<8x16xf32>
    %313 = arith.subf %307, %312 : vector<8x16xf32>
    %c0_99 = arith.constant 0 : index
    %c0_100 = arith.constant 0 : index
    %c0_101 = arith.constant 0 : index
    %314 = vector.load %arg13[%c0_99, %c0_100, %c0_101] : memref<1x8x16xf32, #tpu.memory_space<vmem>>, vector<1x8x16xf32>
    %315 = vector.shape_cast %314 : vector<1x8x16xf32> to vector<8x16xf32>
    %316 = vector.shape_cast %313 : vector<8x16xf32> to vector<1x8x16xf32>
    tpu.vector_store %arg13[%c0_99, %c0_100, %c0_101], %316 {strides = array<i32>} : memref<1x8x16xf32, #tpu.memory_space<vmem>>, vector<1x8x16xf32>,
    return
  }
  func.func @transform_0(%arg0: i32) -> (i32, i32, i32) {
    %c0_i32 = arith.constant 0 : i32
    %c0_i32_0 = arith.constant 0 : i32
    %c0_i32_1 = arith.constant 0 : i32
    return %arg0, %c0_i32, %c0_i32_0 : i32, i32, i32
  }
  func.func @transform_1(%arg0: i32) -> (i32, i32, i32) {
    %c0_i32 = arith.constant 0 : i32
    %c0_i32_0 = arith.constant 0 : i32
    %c0_i32_1 = arith.constant 0 : i32
    return %arg0, %c0_i32, %c0_i32_0 : i32, i32, i32
  }
  func.func @transform_2(%arg0: i32) -> (i32, i32, i32) {
    %c0_i32 = arith.constant 0 : i32
    %c0_i32_0 = arith.constant 0 : i32
    %c0_i32_1 = arith.constant 0 : i32
    %c0_i32_2 = arith.constant 0 : i32
    return %c0_i32, %c0_i32_0, %c0_i32_1 : i32, i32, i32
  }
  func.func @transform_3(%arg0: i32) -> (i32, i32, i32) {
    %c0_i32 = arith.constant 0 : i32
    %c0_i32_0 = arith.constant 0 : i32
    %c0_i32_1 = arith.constant 0 : i32
    %c0_i32_2 = arith.constant 0 : i32
    return %c0_i32, %c0_i32_0, %c0_i32_1 : i32, i32, i32
  }
  func.func @transform_4(%arg0: i32) -> (i32, i32, i32) {
    %c0_i32 = arith.constant 0 : i32
    %c0_i32_0 = arith.constant 0 : i32
    %c0_i32_1 = arith.constant 0 : i32
    %c0_i32_2 = arith.constant 0 : i32
    return %c0_i32, %c0_i32_0, %c0_i32_1 : i32, i32, i32
  }
  func.func @transform_5(%arg0: i32) -> (i32, i32, i32) {
    %c0_i32 = arith.constant 0 : i32
    %c0_i32_0 = arith.constant 0 : i32
    %c0_i32_1 = arith.constant 0 : i32
    %c0_i32_2 = arith.constant 0 : i32
    return %c0_i32, %c0_i32_0, %c0_i32_1 : i32, i32, i32
  }
  func.func @transform_6(%arg0: i32) -> (i32, i32, i32) {
    %c0_i32 = arith.constant 0 : i32
    %c0_i32_0 = arith.constant 0 : i32
    %c0_i32_1 = arith.constant 0 : i32
    %c0_i32_2 = arith.constant 0 : i32
    return %c0_i32, %c0_i32_0, %c0_i32_1 : i32, i32, i32
  }
  func.func @transform_7(%arg0: i32) -> (i32, i32, i32) {
    %c0_i32 = arith.constant 0 : i32
    %c0_i32_0 = arith.constant 0 : i32
    %c0_i32_1 = arith.constant 0 : i32
    %c0_i32_2 = arith.constant 0 : i32
    return %c0_i32, %c0_i32_0, %c0_i32_1 : i32, i32, i32
  }
  func.func @transform_8(%arg0: i32) -> (i32, i32, i32) {
    %c0_i32 = arith.constant 0 : i32
    %c0_i32_0 = arith.constant 0 : i32
    %c0_i32_1 = arith.constant 0 : i32
    %c0_i32_2 = arith.constant 0 : i32
    return %c0_i32, %c0_i32_0, %c0_i32_1 : i32, i32, i32
  }
  func.func @transform_9(%arg0: i32) -> (i32, i32) {
    %c0_i32 = arith.constant 0 : i32
    %c0_i32_0 = arith.constant 0 : i32
    %c0_i32_1 = arith.constant 0 : i32
    return %c0_i32, %c0_i32_0 : i32, i32
  }
  func.func @transform_10(%arg0: i32) -> (i32, i32) {
    %c0_i32 = arith.constant 0 : i32
    %c0_i32_0 = arith.constant 0 : i32
    %c0_i32_1 = arith.constant 0 : i32
    return %c0_i32, %c0_i32_0 : i32, i32
  }
  func.func @transform_11(%arg0: i32) -> (i32, i32) {
    %c0_i32 = arith.constant 0 : i32
    %c0_i32_0 = arith.constant 0 : i32
    %c0_i32_1 = arith.constant 0 : i32
    return %c0_i32, %c0_i32_0 : i32, i32
  }
  func.func @transform_12(%arg0: i32) -> (i32, i32, i32) {
    %c0_i32 = arith.constant 0 : i32
    %c0_i32_0 = arith.constant 0 : i32
    %c0_i32_1 = arith.constant 0 : i32
    return %arg0, %c0_i32, %c0_i32_0 : i32, i32, i32
  }
}

</mosaic_0001>

<bundles_post_ra>
// kernel: tpu_custom_call.1
= control target key start
LH: loop header
LB: loop body
LE: loop exit
PB: predicated region body
PF: predicated region fallthrough
CT: control target
= control target key end

     0   :  { %s4185_s0 = inlined_call_operand.hbm [shape: f32[2,8,32], index: 0, kind: input, shape index: {}]   ;;  %s4186_s1 = inlined_call_operand.hbm [shape: f32[2,8,8], index: 1, kind: input, shape index: {}]   ;;  %s4187_s2 = inlined_call_operand.vmem [shape: f32[2,32,96], index: 2, kind: input, shape index: {}]   ;;  %s4188_s3 = inlined_call_operand.vmem [shape: f32[2,1,96], index: 3, kind: input, shape index: {}]   ;;  %s4189_s4 = inlined_call_operand.vmem [shape: f32[2,32,32], index: 4, kind: input, shape index: {}]   ;;  %s4190_s5 = inlined_call_operand.vmem [shape: f32[2,32,64], index: 5, kind: input, shape index: {}]   ;;  %s4191_s6 = inlined_call_operand.vmem [shape: f32[2,1,64], index: 6, kind: input, shape index: {}]   ;;  %s4192_s7 = inlined_call_operand.vmem [shape: f32[2,64,32], index: 7, kind: input, shape index: {}]   ;;  %s4193_s8 = inlined_call_operand.vmem [shape: f32[2,6,32], index: 8, kind: input, shape index: {}]   ;;  %s4194_s9 = inlined_call_operand.vmem [shape: f32[2,32], index: 9, kind: input, shape index: {}]   ;;  %s4195_s10 = inlined_call_operand.vmem [shape: f32[32,16], index: 10, kind: input, shape index: {}]   ;;  %s4196_s11 = inlined_call_operand.vmem [shape: f32[1,16], index: 11, kind: input, shape index: {}]   ;;  %s4197_s12 = inlined_call_operand.hbm [shape: f32[2,8,16], index: 12, kind: output, shape index: {}]  }
   0x1   :  { %4210 = sst [smem:[#allocation16_spill]] %s4185_s0 }
   0x2   :  { %17 = vsyncpa [#allocation3], 0 }
   0x3   :  { %19 = vsyncpa [#allocation3 + $0x1], 0 }
   0x4   :  { %20 = vsyncpa [#allocation6], 0 }
   0x5   :  { %22 = vsyncpa [#allocation6 + $0x1], 0 }
   0x6   :  { %23 = vsyncpa [#allocation4], 0 }
   0x7   :  { %25 = vsyncpa [#allocation4 + $0x1], 0  ;;  %s3512_s21 = smov 0   ;;  %s3514_s22 = smov 0  }
   0x8   :  { %s3516_s23 = smov 0   ;;  %s3518_s24 = smov 0  }
   0x9 LB: > { %4211 = sst [smem:[#allocation11_spill]] %s3420_s21  ;;  %s3533_s25 = sadd.s32 4294967295, %s3432_s24   ;;  %s3432_s24 = sphi %s3518_s24, %s4237_s24   ;;  %s3428_s23 = sphi %s3516_s23, %s4239_s23   ;;  %s3424_s22 = sphi %s3514_s22, %s4241_s22   ;;  %s3420_s21 = sphi %s3512_s21, %s4240_s21  }
   0xa   : > { %4212 = sst [smem:[#allocation12_spill]] %s3428_s23  ;;  %s2845_s26 = sadd.s32 4294967294, %s3432_s24  }
   0xb   : > { %s3537_s27 = sadd.s32 1, %s3432_s24   ;;  %s38_s28 = sadd.s32 1, %s3428_s23 }
   0xc   : > { %4213 = sst [smem:[#allocation13_spill]] %s3537_s27  ;;  %s35_s29 = ssub.s32 %s3432_s24, %s3537_s27 }
   0xd   : > { %p45_p0 = scmp.ne.s32.totalorder %s3428_s23, %s3424_s22  ;;  %p36_p1 = scmp.eq.s32.totalorder %s35_s29, 0 }
   0xe   : > { %p46_p2 = scmp.eq.s32.totalorder %s3432_s24, 0  ;;  %p51_p3 = scmp.ne.s32.totalorder %s3424_s22, %s3420_s21 }
   0xf   : > { %p52_p4 = scmp.eq.s32.totalorder %s3533_s25, 0  ;;  %p311_p7 = scmp.eq.s32.totalorder %s3533_s25, 1 }
  0x10   : > { %s3549_s30 = scalar_select %p36_p1, %s3428_s23, %s38_s28  }
  0x11   : > { %p3551_p5 = por %p46_p2, %p45_p0  ;;  %p3555_p6 = por %p52_p4, %p51_p3 }
  0x12   : > { %4214 = sst [smem:[#allocation14_spill]] %s3549_s30  ;;  %p317_p8 = scmp.eq.s32.totalorder %s2845_s26, 1 }
  0x13   : > { %s4216_s14 = scalar_select %p3555_p6, 1, 0 }
  0x14   : > { %p3218_p10 = scmp.lt.s32.totalorder %s3432_s24, 2  ;;  %p3562_p11 = por %p311_p7, %p45_p0 }
  0x15   : > { %p3566_p12 = por %p317_p8, %p51_p3  ;;  %s3571_s17 = sand.u32 1, %s3428_s23  }
  0x16   : > { %s4217_s15 = scalar_select %p3562_p11, 1, 0 }
  0x17   : > { %s4218_s16 = scalar_select %p3566_p12, 1, 0 }
  0x18   : > { %s4200_s18 = sshll.u32 %s3432_s24, 7  ;;  %s4199_s19 = sshll.u32 %s3571_s17, 3 }
  0x19   : > { %4219 = sst [smem:[#allocation15_spill]] %s4218_s16  ;;  %s371_s29 = scalar_lea.vmem [#allocation2], %s4199_s19 }
  0x1a   : > { %s4220_s0 = sld [smem:[#allocation16_spill]]  ;;  %s378_s30 = sshll.u32 %s371_s29, 4  ;;  %s3590_s30 = int_to_ptr.vmem [resolvable:$true] %s378_s30 }
  0x1b   : > { %p3586_p13 = pnand %p3218_p10, %p3551_p5  ;;  %s368_s20 = scalar_lea.sflag [#allocation3], %s3571_s17 }
  0x1d   : > { %p3310_p3 = pneg %p3586_p13 }
  0x20   : > { %s3580_s28 = scalar_lea.hbm %s4220_s0, %s4200_s18  ;;  %s3313_s19 = scalar_lea.hbm %s4220_s0, 256 }
  0x21   : > { %s3308_s26 = scalar_lea.hbm %s3580_s28, 128  ;;  %p3314_p5 = scmp.lt.s32.totalorder %s3580_s28, %s4220_s0 }
  0x22   : > { %p3309_p2 = scmp.ne.s32.totalorder %s3580_s28, %s3308_s26  ;;  %p3315_p8 = scmp.lt.s32.totalorder %s3313_s19, %s3308_s26 }
  0x24   : > { %p3311_p4 = pnand %p3310_p3, %p3309_p2  ;;  %p3316_p10 = por %p3315_p8, %p3314_p5 }
  0x26   : > { %p3312_p7 = pneg %p3311_p4 }
  0x28   : > { %p3317_p9 = pnand %p3316_p10, %p3312_p7 }
  0x2a   : > { %3320 = shalt.err (!%p3317_p9)
}
  0x2b   : > { %s3321_s16 = scalar_lea.vmem %s3590_s30, 128  ;;  %s3434_s13 = smov [#allocation2]  }
  0x2c   : > { %p3322_p0 = scmp.ne.s32.totalorder %s3590_s30, %s3321_s16  ;;  %s3326_s29 = sshll.u32 %s3434_s13, 4  ;;  %s3327_s29 = int_to_ptr.vmem [resolvable:$false] %s3326_s29 }
  0x2d   : > { %s3328_s21 = scalar_lea.vmem %s3327_s29, 256  ;;  %p3329_p1 = scmp.lt.s32.totalorder %s3590_s30, %s3327_s29 }
  0x2e   : > { %p3324_p2 = pnand %p3322_p0, %p3310_p3  ;;  %p3330_p12 = scmp.lt.s32.totalorder %s3328_s21, %s3321_s16 }
  0x30   : > { %p3325_p4 = pneg %p3324_p2  ;;  %p3331_p11 = por %p3330_p12, %p3329_p1 }
  0x32   : > { %p3332_p5 = pnand %p3331_p11, %p3325_p4 }
  0x34   : > { %3335 = shalt.err (!%p3332_p5)
}
  0x35   : > { %3210 = dma.hbm_to_vmem [thread:$0]  (!%p3586_p13), %s3580_s28, 128, %s3590_s30, %s368_s20  }
  0x36   : > { %p4222_p9 = scmp.lt.s32.totalorder %s3432_s24, 3  ;;  %p4223_p0 = scmp.ge.s32.totalorder %s3432_s24, 1 }
  0x37   : > { %s4225_s21 = sshll.u32 %s3432_s24, 7  ;;  %s4226_s26 = sshll.u32 %s3571_s17, 3 }
  0x38   : > { %p3623_p7 = pnand %p4223_p0, %p4222_p9  ;;  %s3632_s19 = scalar_lea.hbm %s4186_s1, %s4225_s21 }
  0x39   : > { %s389_s13 = scalar_lea.vmem [#allocation5], %s4226_s26  ;;  %s386_s30 = scalar_lea.sflag [#allocation6], %s3571_s17 }
  0x3a   : > { %s4224_s27 = scalar_select %p3623_p7, 1, 0 }
  0x3b   : > { %s396_s29 = sshll.u32 %s389_s13, 4  ;;  %s3336_s28 = scalar_lea.hbm %s3632_s19, 128  ;;  %s397_s29 = int_to_ptr.vmem [resolvable:$true] %s396_s29 }
  0x3c   : > { %p3337_p11 = scmp.ne.s32.totalorder %s3632_s19, %s3336_s28  ;;  %s3341_s16 = scalar_lea.hbm %s4186_s1, 256 }
  0x3d   : > { %p3342_p8 = scmp.lt.s32.totalorder %s3632_s19, %s4186_s1  ;;  %p3343_p10 = scmp.lt.s32.totalorder %s3341_s16, %s3336_s28 }
  0x3e   : > { %p3339_p12 = pnand %p3337_p11, %p3310_p3 }
  0x3f   : > { %p3344_p2 = por %p3343_p10, %p3342_p8 }
  0x40   : > { %p3340_p1 = pneg %p3339_p12 }
  0x42   : > { %p3345_p4 = pnand %p3344_p2, %p3340_p1 }
  0x44   : > { %3348 = shalt.err (!%p3345_p4)
}
  0x45   : > { %s3349_s26 = scalar_lea.vmem %s397_s29, 128  ;;  %s3435_s17 = smov [#allocation5]  }
  0x46   : > { %p3350_p5 = scmp.ne.s32.totalorder %s397_s29, %s3349_s26  ;;  %s3354_s13 = sshll.u32 %s3435_s17, 4  ;;  %s3355_s13 = int_to_ptr.vmem [resolvable:$false] %s3354_s13 }
  0x47   : > { %s3356_s0 = scalar_lea.vmem %s3355_s13, 256  ;;  %p3357_p11 = scmp.lt.s32.totalorder %s397_s29, %s3355_s13 }
  0x48   : > { %p3352_p9 = pnand %p3350_p5, %p3310_p3  ;;  %p3358_p12 = scmp.lt.s32.totalorder %s3356_s0, %s3349_s26 }
  0x4a   : > { %p3353_p0 = pneg %p3352_p9  ;;  %p3359_p6 = por %p3358_p12, %p3357_p11 }
  0x4c   : > { %p3360_p7 = pnand %p3359_p6, %p3353_p0 }
  0x4e   : > { %3363 = shalt.err (!%p3360_p7)
}
  0x4f   : > { %3213 = dma.hbm_to_vmem [thread:$0]  (!%p3586_p13), %s3632_s19, 128, %s397_s29, %s386_s30  }
  0x50   : > { %p4227_p1 = scmp.ne.s32.totalorder %s4224_s27, 0 }
  0x51   : > { %s3658_s28 = sand.u32 (!%p4227_p1), 1, %s3424_s22   ;;  %p4228_p6 = scmp.ne.s32.totalorder (!%p4227_p1), %s4216_s14, 0 }
  0x52   : > { %405 = sbr.rel (%p4227_p1) target bundleno = 5829 (0x16c5), region = 68  ;;  %s3661_s20 = sshll.u32 (!%p4227_p1), %s3658_s28, 3 }
  0x53   : > { %s408_s16 = scalar_lea.sflag (!%p4227_p1), [#allocation3], %s3658_s28  ;;  %s411_s21 = scalar_lea.vmem (!%p4227_p1), [#allocation2], %s3661_s20 }
  0x57   : > { %3407 = dma.done.wait (%p4228_p6), %s408_s16, 128  }
  0x58   : > { %3409 = vsyncadd (%p4228_p6), %s408_s16, 4294967168  ;;  %s417_s23 = scalar_lea.sflag [#allocation6], %s3658_s28  ;;  %s420_s27 = scalar_lea.vmem [#allocation5], %s3661_s20 }
  0x59   : > { %3411 = dma.done.wait (%p4228_p6), %s417_s23, 128  }
  0x5a   : > { %3413 = vsyncadd (%p4228_p6), %s417_s23, 4294967168  ;;  %vm491_vm0 = vcmask 261120   ;;  %v3675_v0 = vld [vmem:[%s411_s21] sm:$0xff]  ;;  %v471_v7 = vld [vmem:[%s4187_s2 + $0x18] sm:$0xff]  ;;  %v3436_v8 = vmov 0.0   ;;  %vm3437_vm1 = vmmov 0   ;;  %v503_v13 = vlaneseq }
  0x5b   : > { %v492_v1 = vsel %vm491_vm0, %v3675_v0, 0.0  ;;  %3006 = vmatprep.subr.mxu0 %v3436_v8  ;;  %v470_v9 = vld [vmem:[%s4187_s2 + $0x10] sm:$0xff]  ;;  %3014 = vmatprep.mubr.msk.f32.mxu0 %vm3437_vm1, %v3436_v8  ;;  %v469_v10 = vld [vmem:[%s4187_s2 + $0x8] sm:$0xff]  ;;  %v468_v11 = vld [vmem:[%s4187_s2] sm:$0xff]  ;;  %s3438_s19 = smov 104   ;;  %s3439_s29 = smov 120  }
  0x5c   : > { %493 = vadd.xlane.f32.xlu0 %v492_v1  ;;  %3007 = vmatpush3.msra.mxu0 %v471_v7  ;;  %v3703_v16 = vshrl.u32 %v503_v13, 7  ;;  %v3711_v18 = vld [vmem:[%s4193_s8] sm:$0x3f]  ;;  %s3440_s14 = smov 112   ;;  %s3441_s30 = smov 96   ;;  %vm604_vm2 = vcmask 64512  }
  0x5d   : > { %3017 = vmatprep.subr.mxu1 %v3436_v8  ;;  %3008 = vmatprep.subr.mxu0 %v3436_v8  ;;  %v2856_v26 = vld [vmem:[%s4188_s3] ss:$0 sm:$0xff]  ;;  %v3766_v38 = vld [vmem:[%s420_s27] sm:$0xff]  ;;  %s3442_s27 = smov 64   ;;  %s4209_s18 = smov 8   ;;  %vm1276_vm3 = vcmask 130048  }
  0x5e   : > { %3019 = vmatprep.mubr.msk.f32.mxu1 %vm3437_vm1, %v3436_v8  ;;  %3009 = vmatpush3.msra.mxu0 %v470_v9  ;;  %v3706_v17 = vsub.s32 1, %v3703_v16  ;;  %v513_v20 = vsub.s32 2, %v3703_v16  ;;  %s4208_s26 = smov 16   ;;  %s4207_s17 = smov 24   ;;  %vm1278_vm4 = vcmask 195584   ;;  %vm1462_vm5 = vcmask 523264  }
  0x5f   : > { %3010 = vmatprep.subr.mxu0 %v3436_v8  ;;  %s4229_s0 = smov 8   ;;  %s4230_s16 = smov 16  }
  0x60   : > { %3011 = vmatpush3.msra.mxu0 %v469_v10  ;;  %v506_v19 = vrot.slane %v3711_v18, %v3706_v17  ;;  %v514_v22 = vrot.slane %v3711_v18, %v513_v20  ;;  %s465_s21 = scalar_lea.vmem [#allocation7], %s3661_s20  ;;  %p4232_p3 = scmp.ne.s32.totalorder %s4217_s15, 0 }
  0x61   : > { %3012 = vmatprep.subr.mxu0 %v3436_v8 }
  0x62   : > { %3013 = vmatpush3.msra.mxu0 %v468_v11 }
  0x63   : > { %3037 = vmatprep.subr.mxu0 %v3436_v8 }
  0xe5   : > { %v494_v2 = vpop.xlane.xlu0 %493 }
  0xe6   : > { %v496_v3 = vmul.f32 0.03125, %v494_v2 }
  0xe8   : > { %v497_v4 = vsub.f32 %v3675_v0, %v496_v3 }
  0xea   : > { %v498_v5 = vmul.f32 %v497_v4, %v497_v4  ;;  %v507_v21 = vmul.f32 %v506_v19, %v497_v4 }
  0xec   : > { %v499_v6 = vsel %vm491_vm0, %v498_v5, 0.0 }
  0xed   : > { %500 = vadd.xlane.f32.xlu0 %v499_v6 }
 0x176   : > { %v501_v12 = vpop.xlane.xlu0 %500 }
 0x177   : > { %v502_v14 = vmul.f32 0.03125, %v501_v12 }
 0x179   : > { %v508_v15 = vadd.f32 1e-06, %v502_v14 }
 0x17b   : > { %3262 = vrsqrt.f32 %v508_v15 }
 0x188   : > { %v3263_v23 = vpop.eup %3262 }
 0x189   : > { %v510_v24 = vmul.f32 %v3263_v23, %v507_v21 }
 0x18b   : > { %v515_v25 = vadd.f32 %v514_v22, %v510_v24 }
 0x18d   : > { %3015 = vmatmul.mubr.msk.f32.vlgmr.msra.gmra.mxu0 %vm491_vm0, %v515_v25 }
 0x18e   : > { %3039 = vmatprep.mubr.msk.f32.mxu0 %vm3437_vm1, %v3436_v8 }
 0x24d   : > { %v591_v27 = vpop.f32.mrf.mxu0 }
 0x24e   : > { %v592_v28 = vadd.f32 %v2856_v26, %v591_v27 }
 0x24f   : > { %v3016_v29 = vpop.f32.mrf.mxu0 }
 0x250   : > { %600 = vrot.lane.b32.xlu0 %v592_v28, %s3438_s19  ;;  %596 = vrot.lane.b32.xlu1 %v592_v28, %s3439_s29 }
 0x254   : > { %598 = vrot.lane.b32.xlu1 %v592_v28, %s3440_s14 }
 0x258   : > { %602 = vrot.lane.b32.xlu1 %v592_v28, %s3441_s30 }
 0x2c2   : > { %v3729_v30 = vpop.permute.xlu1 %596  ;;  %v3737_v32 = vpop.permute.xlu0 %600 }
 0x2c3   : > { %679 = vrot.lane.b32.xlu1 %v3729_v30, %s3441_s30 }
 0x2c6   : > { %v3733_v31 = vpop.permute.xlu1 %598 }
 0x2c7   : > { %755 = vrot.lane.b32.xlu1 %v3733_v31, %s3441_s30 }
 0x2ca   : > { %v603_v33 = vpop.permute.xlu1 %602 }
 0x2cb   : > { %831 = vrot.lane.b32.xlu1 %v3737_v32, %s3441_s30  ;;  %3018 = vmatpush3.xpose.msk.msra.mxu1 %vm604_vm2, %v603_v33 }
 0x2cc   : > { %3022 = vmatprep.subr.mxu1 %v3436_v8 }
 0x2ce   : > { %3020 = vmatmul.mubr.msk.f32.vlgmr.msra.gmra.mxu1 %vm604_vm2, %v592_v28 }
 0x2cf   : > { %3024 = vmatprep.mubr.msk.f32.mxu1 %vm3437_vm1, %v3436_v8 }
 0x335   : > { %v680_v34 = vpop.permute.xlu1 %679 }
 0x336   : > { %3023 = vmatpush3.xpose.msk.msra.mxu1 %vm604_vm2, %v680_v34 }
 0x337   : > { %3027 = vmatprep.subr.mxu1 %v3436_v8 }
 0x339   : > { %3025 = vmatmul.mubr.msk.f32.vlgmr.msra.gmra.mxu1 %vm604_vm2, %v3729_v30  ;;  %v756_v35 = vpop.permute.xlu1 %755 }
 0x33a   : > { %3028 = vmatpush3.xpose.msk.msra.mxu1 %vm604_vm2, %v756_v35  ;;  %3029 = vmatprep.mubr.msk.f32.mxu1 %vm3437_vm1, %v3436_v8 }
 0x33b   : > { %3032 = vmatprep.subr.mxu1 %v3436_v8 }
 0x33d   : > { %3030 = vmatmul.mubr.msk.f32.vlgmr.msra.gmra.mxu1 %vm604_vm2, %v3733_v31  ;;  %v832_v36 = vpop.permute.xlu1 %831 }
 0x33e   : > { %3033 = vmatpush3.xpose.msk.msra.mxu1 %vm604_vm2, %v832_v36  ;;  %3034 = vmatprep.mubr.msk.f32.mxu1 %vm3437_vm1, %v3436_v8 }
 0x33f   : > { %3042 = vmatprep.subr.mxu1 %v3436_v8 }
 0x341   : > { %3035 = vmatmul.mubr.msk.f32.vlgmr.msra.gmra.mxu1 %vm604_vm2, %v3737_v32 }
 0x342   : > { %3044 = vmatprep.mubr.msk.f32.mxu1 %vm3437_vm1, %v3436_v8 }
 0x38e   : > { %v675_v37 = vpop.f32.mrf.mxu1 }
 0x38f   : > { %v907_v39 = vmul.f32 0.35355338, %v675_v37 }
 0x390   : > { %v3021_v40 = vpop.f32.mrf.mxu1 }
 0x391   : > { %v911_v41 = vadd.f32 %v907_v39, %v3766_v38  ;;  %v476_v39 = vld [vmem:[%s4189_s4 + $0x18] sm:$0xff]  ;;  %v475_v40 = vld [vmem:[%s4189_s4 + $0x10] sm:$0xff] }
 0x393   : > { %v915_v42 = vsel %vm604_vm2, %v911_v41, -inf }
 0x394   : > { %916 = vmax.xlane.f32.xlu1 %v915_v42  ;;  %v473_v42 = vld [vmem:[%s4189_s4] sm:$0xff] }
 0x3f9   : > { %v751_v43 = vpop.f32.mrf.mxu1 }
 0x3fa   : > { %v908_v44 = vmul.f32 0.35355338, %v751_v43 }
 0x3fb   : > { %v3026_v45 = vpop.f32.mrf.mxu1 }
 0x3fc   : > { %v912_v46 = vadd.f32 %v908_v44, %v3766_v38 }
 0x3fd   : > { %v827_v47 = vpop.f32.mrf.mxu1 }
 0x3fe   : > { %v909_v48 = vmul.f32 0.35355338, %v827_v47  ;;  %v918_v49 = vsel %vm604_vm2, %v912_v46, -inf }
 0x3ff   : > { %919 = vmax.xlane.f32.xlu0 %v918_v49  ;;  %v3031_v50 = vpop.f32.mrf.mxu1 }
 0x400   : > { %v913_v51 = vadd.f32 %v909_v48, %v3766_v38 }
 0x401   : > { %v903_v52 = vpop.f32.mrf.mxu1 }
 0x402   : > { %v910_v53 = vmul.f32 0.35355338, %v903_v52  ;;  %v921_v54 = vsel %vm604_vm2, %v913_v51, -inf }
 0x403   : > { %922 = vmax.xlane.f32.xlu1 %v921_v54  ;;  %v3036_v55 = vpop.f32.mrf.mxu1 }
 0x404   : > { %v914_v56 = vadd.f32 %v910_v53, %v3766_v38  ;;  %v3829_v55 = vsub.s32 0, %v3703_v16 }
 0x406   : > { %v924_v57 = vsel %vm604_vm2, %v914_v56, -inf }
 0x407   : > { %925 = vmax.xlane.f32.xlu0 %v924_v57 }
 0x414   : > { %959 = vrot.lane.b32.xlu1 %v592_v28, %s3442_s27 }
 0x41d   : > { %v917_v58 = vpop.xlane.xlu1 %916 }
 0x41e   : > { %v927_v59 = vsub.f32 %v911_v41, %v917_v58  ;;  %v474_v41 = vld [vmem:[%s4189_s4 + $0x8] sm:$0xff] }
 0x420   : > { %v931_v60 = vmul.f32 1.442695, %v927_v59 }
 0x422   : > { %3264 = vpow2.f32 %v931_v60 }
 0x42f   : > { %v3265_v61 = vpop.eup %3264 }
 0x430   : > { %v939_v62 = vsel %vm604_vm2, %v3265_v61, 0.0 }
 0x438   : > { %940 = vadd.xlane.f32.xlu1 %v939_v62 }
 0x488   : > { %v920_v63 = vpop.xlane.xlu0 %919 }
 0x489   : > { %v928_v1 = vsub.f32 %v912_v46, %v920_v63 }
 0x48b   : > { %v933_v2 = vmul.f32 1.442695, %v928_v1 }
 0x48c   : > { %v923_v3 = vpop.xlane.xlu1 %922 }
 0x48d   : > { %3266 = vpow2.f32 %v933_v2  ;;  %v929_v4 = vsub.f32 %v913_v51, %v923_v3 }
 0x48f   : > { %v935_v5 = vmul.f32 1.442695, %v929_v4  ;;  %v480_v4 = vld [vmem:[%s4190_s5 + $0x18] sm:$0xff] }
 0x490   : > { %v926_v6 = vpop.xlane.xlu0 %925  ;;  %v960_v7 = vpop.permute.xlu1 %959 }
 0x491   : > { %3268 = vpow2.f32 %v935_v5  ;;  %v930_v9 = vsub.f32 %v914_v56, %v926_v6  ;;  %3038 = vmatpush3.msra.mxu0 %v960_v7  ;;  %v1357_v56 = vrot.slane %v3711_v18, %v3829_v55  ;;  %v478_v5 = vld [vmem:[%s4190_s5 + $0x8] sm:$0xff]  ;;  %v477_v6 = vld [vmem:[%s4190_s5] sm:$0xff]  ;;  %v489_v7 = vld [vmem:[%s4192_s7 + $0x38] sm:$0xff] }
 0x492   : > { %3047 = vmatprep.subr.mxu0 %v3436_v8 }
 0x493   : > { %v937_v10 = vmul.f32 1.442695, %v930_v9  ;;  %v488_v9 = vld [vmem:[%s4192_s7 + $0x30] sm:$0xff] }
 0x495   : > { %3270 = vpow2.f32 %v937_v10  ;;  %v487_v10 = vld [vmem:[%s4192_s7 + $0x28] sm:$0xff] }
 0x49a   : > { %v3267_v11 = vpop.eup %3266 }
 0x49b   : > { %v942_v12 = vsel %vm604_vm2, %v3267_v11, 0.0 }
 0x49c   : > { %943 = vadd.xlane.f32.xlu0 %v942_v12  ;;  %v485_v12 = vld [vmem:[%s4192_s7 + $0x18] sm:$0xff] }
 0x49e   : > { %v3269_v13 = vpop.eup %3268 }
 0x49f   : > { %v945_v14 = vsel %vm604_vm2, %v3269_v13, 0.0 }
 0x4a0   : > { %946 = vadd.xlane.f32.xlu1 %v945_v14 }
 0x4a2   : > { %v3271_v15 = vpop.eup %3270 }
 0x4a3   : > { %v948_v19 = vsel %vm604_vm2, %v3271_v15, 0.0 }
 0x4a4   : > { %949 = vadd.xlane.f32.xlu0 %v948_v19  ;;  %v1371_v19 = vsub.s32 3, %v3703_v16 }
 0x4b1   : > { %1111 = vrot.lane.b32.xlu1 %v3733_v31, %s3442_s27 }
 0x4b5   : > { %1187 = vrot.lane.b32.xlu1 %v3737_v32, %s3442_s27 }
 0x4ba   : > { %1035 = vrot.lane.b32.xlu0 %v3729_v30, %s3442_s27 }
 0x4c1   : > { %v941_v21 = vpop.xlane.xlu1 %940 }
 0x4c2   : > { %3272 = vrcp.f32 %v941_v21  ;;  %v1372_v21 = vrot.slane %v3711_v18, %v1371_v19 }
 0x4cf   : > { %v3273_v22 = vpop.eup %3272 }
 0x4d0   : > { %v952_v23 = vmul.f32 %v3273_v22, %v3265_v61  ;;  %v1379_v22 = vsub.s32 4, %v3703_v16 }
 0x4d2   : > { %3040 = vmatmul.mubr.msk.f32.vlgmr.msra.gmra.mxu0 %vm604_vm2, %v952_v23 }
 0x4d3   : > { %3049 = vmatprep.mubr.msk.f32.mxu0 %vm3437_vm1, %v3436_v8 }
 0x525   : > { %v944_v24 = vpop.xlane.xlu0 %943 }
 0x526   : > { %3274 = vrcp.f32 %v944_v24  ;;  %v1380_v24 = vrot.slane %v3711_v18, %v1379_v22 }
 0x529   : > { %v947_v25 = vpop.xlane.xlu1 %946 }
 0x52a   : > { %3276 = vrcp.f32 %v947_v25 }
 0x52d   : > { %v950_v26 = vpop.xlane.xlu0 %949  ;;  %v1112_v27 = vpop.permute.xlu1 %1111 }
 0x52e   : > { %3278 = vrcp.f32 %v950_v26  ;;  %3048 = vmatpush3.msra.mxu0 %v1112_v27 }
 0x52f   : > { %3057 = vmatprep.subr.mxu0 %v3436_v8 }
 0x531   : > { %v1036_v28 = vpop.permute.xlu0 %1035  ;;  %v1188_v31 = vpop.permute.xlu1 %1187 }
 0x532   : > { %3043 = vmatpush3.msra.mxu1 %v1036_v28  ;;  %v484_v28 = vld [vmem:[%s4192_s7 + $0x10] sm:$0xff] }
 0x533   : > { %v3275_v29 = vpop.eup %3274  ;;  %3052 = vmatprep.subr.mxu1 %v3436_v8 }
 0x534   : > { %v954_v30 = vmul.f32 %v3275_v29, %v3267_v11  ;;  %v486_v11 = vld [vmem:[%s4192_s7 + $0x20] sm:$0xff]  ;;  %v483_v29 = vld [vmem:[%s4192_s7 + $0x8] sm:$0xff] }
 0x536   : > { %3045 = vmatmul.mubr.msk.f32.vlgmr.msra.gmra.mxu1 %vm604_vm2, %v954_v30  ;;  %v482_v30 = vld [vmem:[%s4192_s7] sm:$0xff] }
 0x537   : > { %v3277_v32 = vpop.eup %3276  ;;  %3053 = vmatpush3.msra.mxu1 %v1188_v31  ;;  %3054 = vmatprep.mubr.msk.f32.mxu1 %vm3437_vm1, %v3436_v8  ;;  %v2871_v31 = vld [vmem:[%s4191_s6] ss:$0 sm:$0xff] }
 0x538   : > { %v956_v33 = vmul.f32 %v3277_v32, %v3269_v13  ;;  %3068 = vmatprep.subr.mxu1 %v3436_v8 }
 0x53a   : > { %3050 = vmatmul.mubr.msk.f32.vlgmr.msra.gmra.mxu0 %vm604_vm2, %v956_v33 }
 0x53b   : > { %v3279_v34 = vpop.eup %3278  ;;  %3065 = vmatprep.mubr.msk.f32.mxu0 %vm3437_vm1, %v3436_v8  ;;  %3058 = vmatpush3.msra.mxu0 %v476_v39 }
 0x53c   : > { %v958_v35 = vmul.f32 %v3279_v34, %v3271_v15  ;;  %3059 = vmatprep.subr.mxu0 %v3436_v8 }
 0x53d   : > { %3060 = vmatpush3.msra.mxu0 %v475_v40 }
 0x53e   : > { %3055 = vmatmul.mubr.msk.f32.vlgmr.msra.gmra.mxu1 %vm604_vm2, %v958_v35  ;;  %3061 = vmatprep.subr.mxu0 %v3436_v8 }
 0x53f   : > { %3076 = vmatprep.mubr.msk.f32.mxu1 %vm3437_vm1, %v3436_v8  ;;  %3062 = vmatpush3.msra.mxu0 %v474_v41 }
 0x540   : > { %3063 = vmatprep.subr.mxu0 %v3436_v8  ;;  %3069 = vmatpush3.msra.mxu1 %v480_v4 }
 0x541   : > { %3064 = vmatpush3.msra.mxu0 %v473_v42  ;;  %3070 = vmatprep.subr.mxu1 %v3436_v8 }
 0x542   : > { %3079 = vmatprep.subr.mxu0 %v3436_v8 }
 0x592   : > { %v1031_v36 = vpop.f32.mrf.mxu0 }
 0x594   : > { %v3041_v37 = vpop.f32.mrf.mxu0 }
 0x5f6   : > { %v1107_v43 = vpop.f32.mrf.mxu1 }
 0x5f7   : > { %1264 = vrot.lane.b32.xlu0 %v1107_v43, %s4209_s18  ;;  %s2752_s18 = sshll.u32 %s465_s21, 4  ;;  %s2753_s18 = int_to_ptr.vmem [resolvable:$true] %s2752_s18 }
 0x5f8   : > { %v3046_v44 = vpop.f32.mrf.mxu1 }
 0x5fa   : > { %v1183_v45 = vpop.f32.mrf.mxu0 }
 0x5fb   : > { %1268 = vrot.lane.b32.xlu1 %v1183_v45, %s4208_s26  ;;  %s3446_s26 = smov [#allocation7]  }
 0x5fc   : > { %v3051_v46 = vpop.f32.mrf.mxu0  ;;  %s3368_s23 = sshll.u32 %s3446_s26, 4  ;;  %s3369_s23 = int_to_ptr.vmem [resolvable:$false] %s3368_s23 }
 0x5fd   : > { %p3371_p10 = scmp.lt.s32.totalorder %s2753_s18, %s3369_s23 }
 0x5fe   : > { %v1259_v47 = vpop.f32.mrf.mxu1 }
 0x5ff   : > { %1272 = vrot.lane.b32.xlu0 %v1259_v47, %s4207_s17  ;;  %s4231_s17 = smov 24  }
 0x600   : > { %v3056_v48 = vpop.f32.mrf.mxu1 }
 0x669   : > { %v1265_v49 = vpop.permute.xlu0 %1264 }
 0x66a   : > { %v1275_v51 = vsel %vm604_vm2, %v1031_v36, %v1265_v49  ;;  %v1539_v36 = vsub.s32 5, %v3703_v16  ;;  %v2876_v49 = vld [vmem:[%s4187_s2 + $0x30] sm:$0xff]  ;;  %v2644_v16 = vld [vmem:[%s4195_s10 + $0x18] sm:$0xff] }
 0x66c   : > { %v1540_v37 = vrot.slane %v3711_v18, %v1539_v36  ;;  %v2877_v18 = vld [vmem:[%s4187_s2 + $0x38] sm:$0xff] }
 0x66d   : > { %v1269_v50 = vpop.permute.xlu1 %1268 }
 0x66e   : > { %v1277_v52 = vsel %vm1276_vm3, %v1275_v51, %v1269_v50  ;;  %v2875_v50 = vld [vmem:[%s4187_s2 + $0x28] sm:$0xff]  ;;  %v2874_v51 = vld [vmem:[%s4187_s2 + $0x20] sm:$0xff] }
 0x671   : > { %v1273_v53 = vpop.permute.xlu0 %1272 }
 0x672   : > { %v1279_v54 = vsel %vm1278_vm4, %v1277_v52, %v1273_v53 }
 0x673   : > { %3066 = vmatmul.mubr.msk.f32.vlgmr.msra.gmra.mxu0 %vm491_vm0, %v1279_v54 }
 0x674   : > { %3095 = vmatprep.mubr.msk.f32.mxu0 %vm3437_vm1, %v3436_v8  ;;  %3080 = vmatpush3.msra.mxu0 %v489_v7 }
 0x675   : > { %3081 = vmatprep.subr.mxu0 %v3436_v8 }
 0x676   : > { %3082 = vmatpush3.msra.mxu0 %v488_v9 }
 0x677   : > { %3083 = vmatprep.subr.mxu0 %v3436_v8 }
 0x678   : > { %3084 = vmatpush3.msra.mxu0 %v487_v10 }
 0x679   : > { %3085 = vmatprep.subr.mxu0 %v3436_v8 }
 0x67a   : > { %3086 = vmatpush3.msra.mxu0 %v486_v11 }
 0x67b   : > { %3087 = vmatprep.subr.mxu0 %v3436_v8 }
 0x67c   : > { %3088 = vmatpush3.msra.mxu0 %v485_v12 }
 0x67d   : > { %3089 = vmatprep.subr.mxu0 %v3436_v8 }
 0x67e   : > { %3090 = vmatpush3.msra.mxu0 %v484_v28 }
 0x67f   : > { %3091 = vmatprep.subr.mxu0 %v3436_v8 }
 0x680   : > { %3092 = vmatpush3.msra.mxu0 %v483_v29 }
 0x681   : > { %3093 = vmatprep.subr.mxu0 %v3436_v8 }
 0x682   : > { %3094 = vmatpush3.msra.mxu0 %v482_v30 }
 0x683   : > { %3119 = vmatprep.subr.mxu0 %v3436_v8 }
 0x733   : > { %v1349_v57 = vpop.f32.mrf.mxu0 }
 0x734   : > { %v1353_v58 = vadd.f32 %v1349_v57, %v3675_v0  ;;  %v479_v0 = vld [vmem:[%s4190_s5 + $0x10] sm:$0xff] }
 0x735   : > { %v3067_v59 = vpop.f32.mrf.mxu0  ;;  %3071 = vmatpush3.msra.mxu1 %v479_v0 }
 0x736   : > { %v3834_v60 = vadd.f32 %v1357_v56, %v1353_v58  ;;  %3072 = vmatprep.subr.mxu1 %v3436_v8  ;;  %v3935_v56 = vld [vmem:[%s4193_s8 + $0x8] sm:$0x3f] }
 0x737   : > { %3073 = vmatpush3.msra.mxu1 %v478_v5  ;;  %v1585_v57 = vrot.slane %v3935_v56, %v3706_v17  ;;  %v1593_v58 = vrot.slane %v3935_v56, %v513_v20 }
 0x738   : > { %v1359_v61 = vsel %vm491_vm0, %v3834_v60, 0.0  ;;  %3074 = vmatprep.subr.mxu1 %v3436_v8 }
 0x739   : > { %1360 = vadd.xlane.f32.xlu1 %v1359_v61  ;;  %3075 = vmatpush3.msra.mxu1 %v477_v6 }
 0x73a   : > { %3098 = vmatprep.subr.mxu1 %v3436_v8 }
 0x7c2   : > { %v1361_v62 = vpop.xlane.xlu1 %1360 }
 0x7c3   : > { %v1362_v63 = vmul.f32 0.03125, %v1361_v62 }
 0x7c5   : > { %v1363_v1 = vsub.f32 %v3834_v60, %v1362_v63  ;;  %v2897_v63 = vld [vmem:[%s4188_s3 + $0x1] ss:$0 sm:$0xff] }
 0x7c7   : > { %v1364_v2 = vmul.f32 %v1363_v1, %v1363_v1  ;;  %v1373_v23 = vmul.f32 %v1372_v21, %v1363_v1 }
 0x7c9   : > { %v1365_v3 = vsel %vm491_vm0, %v1364_v2, 0.0 }
 0x7ca   : > { %1366 = vadd.xlane.f32.xlu0 %v1365_v3 }
 0x853   : > { %v1367_v13 = vpop.xlane.xlu0 %1366 }
 0x854   : > { %v1368_v14 = vmul.f32 0.03125, %v1367_v13 }
 0x856   : > { %v1374_v15 = vadd.f32 1e-06, %v1368_v14 }
 0x858   : > { %3280 = vrsqrt.f32 %v1374_v15 }
 0x865   : > { %v3281_v25 = vpop.eup %3280 }
 0x866   : > { %v1376_v26 = vmul.f32 %v3281_v25, %v1373_v23 }
 0x868   : > { %v1381_v27 = vadd.f32 %v1380_v24, %v1376_v26 }
 0x86a   : > { %3077 = vmatmul.mubr.msk.f32.vlgmr.msra.gmra.mxu1 %vm491_vm0, %v1381_v27 }
 0x86b   : > { %3106 = vmatprep.mubr.msk.f32.mxu1 %vm3437_vm1, %v3436_v8  ;;  %3099 = vmatpush3.msra.mxu1 %v2877_v18 }
 0x86c   : > { %3100 = vmatprep.subr.mxu1 %v3436_v8 }
 0x86d   : > { %3101 = vmatpush3.msra.mxu1 %v2876_v49 }
 0x86e   : > { %3102 = vmatprep.subr.mxu1 %v3436_v8 }
 0x86f   : > { %3103 = vmatpush3.msra.mxu1 %v2875_v50 }
 0x870   : > { %3104 = vmatprep.subr.mxu1 %v3436_v8 }
 0x871   : > { %3105 = vmatpush3.msra.mxu1 %v2874_v51 }
 0x872   : > { %3109 = vmatprep.subr.mxu1 %v3436_v8 }
 0x92a   : > { %v1457_v32 = vpop.f32.mrf.mxu1 }
 0x92b   : > { %v1458_v33 = vadd.f32 %v2871_v31, %v1457_v32 }
 0x92c   : > { %v3078_v34 = vpop.f32.mrf.mxu1 }
 0x92d   : > { %v1461_v35 = vmax.f32 %v1458_v33, 0.0 }
 0x92f   : > { %3096 = vmatmul.mubr.msk.f32.vlgmr.msra.gmra.mxu0 %vm1462_vm5, %v1461_v35 }
 0x930   : > { %3121 = vmatprep.mubr.msk.f32.mxu0 %vm3437_vm1, %v3436_v8 }
 0x9ef   : > { %v1532_v39 = vpop.f32.mrf.mxu0 }
 0x9f0   : > { %v1536_v40 = vadd.f32 %v1532_v39, %v3834_v60 }
 0x9f1   : > { %v3097_v41 = vpop.f32.mrf.mxu0 }
 0x9f2   : > { %v3910_v42 = vadd.f32 %v1540_v37, %v1536_v40 }
 0x9f4   : > { %v1572_v43 = vsel %vm491_vm0, %v3910_v42, 0.0 }
 0x9f5   : > { %1573 = vadd.xlane.f32.xlu0 %v1572_v43 }
 0xa7e   : > { %v1574_v44 = vpop.xlane.xlu0 %1573 }
 0xa7f   : > { %v1575_v45 = vmul.f32 0.03125, %v1574_v44 }
 0xa81   : > { %v1576_v46 = vsub.f32 %v3910_v42, %v1575_v45 }
 0xa83   : > { %v1577_v47 = vmul.f32 %v1576_v46, %v1576_v46  ;;  %v1586_v59 = vmul.f32 %v1585_v57, %v1576_v46 }
 0xa85   : > { %v1578_v48 = vsel %vm491_vm0, %v1577_v47, 0.0 }
 0xa86   : > { %1579 = vadd.xlane.f32.xlu1 %v1578_v48 }
 0xb0f   : > { %v1580_v52 = vpop.xlane.xlu1 %1579 }
 0xb10   : > { %v1581_v53 = vmul.f32 0.03125, %v1580_v52 }
 0xb12   : > { %v1587_v54 = vadd.f32 1e-06, %v1581_v53 }
 0xb14   : > { %3282 = vrsqrt.f32 %v1587_v54 }
 0xb21   : > { %v3283_v60 = vpop.eup %3282 }
 0xb22   : > { %v1589_v61 = vmul.f32 %v3283_v60, %v1586_v59 }
 0xb24   : > { %v1594_v62 = vadd.f32 %v1593_v58, %v1589_v61 }
 0xb26   : > { %3107 = vmatmul.mubr.msk.f32.vlgmr.msra.gmra.mxu1 %vm491_vm0, %v1594_v62 }
 0xb27   : > { %3111 = vmatprep.mubr.msk.f32.mxu1 %vm3437_vm1, %v3436_v8 }
 0xbe6   : > { %v1670_v1 = vpop.f32.mrf.mxu1 }
 0xbe7   : > { %v1671_v2 = vadd.f32 %v2897_v63, %v1670_v1 }
 0xbe8   : > { %v3108_v3 = vpop.f32.mrf.mxu1 }
 0xbe9   : > { %1677 = vrot.lane.b32.xlu1 %v1671_v2, %s3440_s14  ;;  %1675 = vrot.lane.b32.xlu0 %v1671_v2, %s3439_s29 }
 0xbed   : > { %1679 = vrot.lane.b32.xlu1 %v1671_v2, %s3438_s19  ;;  %1681 = vrot.lane.b32.xlu0 %v1671_v2, %s3441_s30 }
 0xc5b   : > { %v3952_v20 = vpop.permute.xlu1 %1677  ;;  %v3954_v4 = vpop.permute.xlu0 %1675 }
 0xc5c   : > { %1833 = vrot.lane.b32.xlu0 %v3952_v20, %s3441_s30  ;;  %1757 = vrot.lane.b32.xlu1 %v3954_v4, %s3441_s30 }
 0xc5f   : > { %v3960_v0 = vpop.permute.xlu1 %1679  ;;  %v1682_v5 = vpop.permute.xlu0 %1681 }
 0xc60   : > { %1909 = vrot.lane.b32.xlu1 %v3960_v0, %s3441_s30  ;;  %3110 = vmatpush3.xpose.msk.msra.mxu1 %vm604_vm2, %v1682_v5  ;;  %s2739_s30 = scalar_lea.sflag [#allocation4], %s3658_s28 }
 0xc61   : > { %3114 = vmatprep.subr.mxu1 %v3436_v8 }
 0xc63   : > { %3112 = vmatmul.mubr.msk.f32.vlgmr.msra.gmra.mxu1 %vm604_vm2, %v1671_v2 }
 0xc64   : > { %3116 = vmatprep.mubr.msk.f32.mxu1 %vm3437_vm1, %v3436_v8 }
 0xcce   : > { %v1758_v6 = vpop.permute.xlu1 %1757  ;;  %v1834_v7 = vpop.permute.xlu0 %1833 }
 0xccf   : > { %3115 = vmatpush3.xpose.msk.msra.mxu1 %vm604_vm2, %v1758_v6  ;;  %3120 = vmatpush3.xpose.msk.msra.mxu0 %vm604_vm2, %v1834_v7 }
 0xcd0   : > { %3124 = vmatprep.subr.mxu1 %v3436_v8  ;;  %3129 = vmatprep.subr.mxu0 %v3436_v8 }
 0xcd2   : > { %v1910_v9 = vpop.permute.xlu1 %1909  ;;  %3117 = vmatmul.mubr.msk.f32.vlgmr.msra.gmra.mxu1 %vm604_vm2, %v3954_v4  ;;  %3122 = vmatmul.mubr.msk.f32.vlgmr.msra.gmra.mxu0 %vm604_vm2, %v3952_v20 }
 0xcd3   : > { %3125 = vmatpush3.xpose.msk.msra.mxu1 %vm604_vm2, %v1910_v9  ;;  %3126 = vmatprep.mubr.msk.f32.mxu1 %vm3437_vm1, %v3436_v8 }
 0xcd4   : > { %3131 = vmatprep.mubr.msk.f32.mxu0 %vm3437_vm1, %v3436_v8  ;;  %3134 = vmatprep.subr.mxu1 %v3436_v8 }
 0xcd6   : > { %3127 = vmatmul.mubr.msk.f32.vlgmr.msra.gmra.mxu1 %vm604_vm2, %v3960_v0 }
 0xcd7   : > { %3136 = vmatprep.mubr.msk.f32.mxu1 %vm3437_vm1, %v3436_v8 }
 0xd23   : > { %v1753_v10 = vpop.f32.mrf.mxu1 }
 0xd24   : > { %v1985_v11 = vmul.f32 0.35355338, %v1753_v10 }
 0xd25   : > { %v3113_v12 = vpop.f32.mrf.mxu1 }
 0xd26   : > { %v1989_v13 = vadd.f32 %v1985_v11, %v3766_v38  ;;  %v2882_v11 = vld [vmem:[%s4189_s4 + $0x38] sm:$0xff] }
 0xd28   : > { %v1993_v14 = vsel %vm604_vm2, %v1989_v13, -inf }
 0xd29   : > { %1994 = vmax.xlane.f32.xlu0 %v1993_v14  ;;  %v2881_v14 = vld [vmem:[%s4189_s4 + $0x30] sm:$0xff] }
 0xd92   : > { %v1829_v15 = vpop.f32.mrf.mxu1  ;;  %v1905_v21 = vpop.f32.mrf.mxu0 }
 0xd93   : > { %v1986_v23 = vmul.f32 0.35355338, %v1829_v15  ;;  %v1987_v24 = vmul.f32 0.35355338, %v1905_v21  ;;  %v2880_v15 = vld [vmem:[%s4189_s4 + $0x28] sm:$0xff]  ;;  %v2879_v21 = vld [vmem:[%s4189_s4 + $0x20] sm:$0xff] }
 0xd94   : > { %v3118_v25 = vpop.f32.mrf.mxu1  ;;  %v3123_v26 = vpop.f32.mrf.mxu0 }
 0xd95   : > { %v1990_v27 = vadd.f32 %v1986_v23, %v3766_v38  ;;  %v1991_v28 = vadd.f32 %v1987_v24, %v3766_v38 }
 0xd96   : > { %v1981_v29 = vpop.f32.mrf.mxu1 }
 0xd97   : > { %v1988_v30 = vmul.f32 0.35355338, %v1981_v29  ;;  %v1996_v31 = vsel %vm604_vm2, %v1990_v27, -inf  ;;  %v1999_v32 = vsel %vm604_vm2, %v1991_v28, -inf }
 0xd98   : > { %1997 = vmax.xlane.f32.xlu1 %v1996_v31  ;;  %v3128_v33 = vpop.f32.mrf.mxu1  ;;  %2000 = vmax.xlane.f32.xlu0 %v1999_v32 }
 0xd99   : > { %v1992_v34 = vadd.f32 %v1988_v30, %v3766_v38 }
 0xd9b   : > { %v2002_v35 = vsel %vm604_vm2, %v1992_v34, -inf }
 0xd9c   : > { %2003 = vmax.xlane.f32.xlu0 %v2002_v35  ;;  %v2433_v35 = vrot.slane %v3935_v56, %v3829_v55 }
 0xda9   : > { %2037 = vrot.lane.b32.xlu1 %v1671_v2, %s3442_s27 }
 0xdb2   : > { %v1995_v37 = vpop.xlane.xlu0 %1994 }
 0xdb3   : > { %v2005_v39 = vsub.f32 %v1989_v13, %v1995_v37 }
 0xdb5   : > { %v2009_v40 = vmul.f32 1.442695, %v2005_v39 }
 0xdb7   : > { %3284 = vpow2.f32 %v2009_v40 }
 0xdc4   : > { %v3285_v41 = vpop.eup %3284 }
 0xdc5   : > { %v2017_v43 = vsel %vm604_vm2, %v3285_v41, 0.0 }
 0xdcd   : > { %2018 = vadd.xlane.f32.xlu1 %v2017_v43 }
 0xe21   : > { %v1998_v44 = vpop.xlane.xlu1 %1997  ;;  %v2001_v45 = vpop.xlane.xlu0 %2000 }
 0xe22   : > { %v2006_v46 = vsub.f32 %v1990_v27, %v1998_v44  ;;  %v2007_v47 = vsub.f32 %v1991_v28, %v2001_v45 }
 0xe24   : > { %v2011_v48 = vmul.f32 1.442695, %v2006_v46  ;;  %v2013_v18 = vmul.f32 1.442695, %v2007_v47 }
 0xe25   : > { %v2038_v38 = vpop.permute.xlu1 %2037  ;;  %v2004_v49 = vpop.xlane.xlu0 %2003 }
 0xe26   : > { %3286 = vpow2.f32 %v2011_v48  ;;  %v2008_v50 = vsub.f32 %v1992_v34, %v2004_v49  ;;  %3130 = vmatpush3.msra.mxu0 %v2038_v38  ;;  %v2884_v38 = vld [vmem:[%s4190_s5 + $0x28] sm:$0xff]  ;;  %v2883_v49 = vld [vmem:[%s4190_s5 + $0x20] sm:$0xff] }
 0xe27   : > { %3288 = vpow2.f32 %v2013_v18  ;;  %3139 = vmatprep.subr.mxu0 %v3436_v8  ;;  %v2886_v18 = vld [vmem:[%s4190_s5 + $0x38] sm:$0xff] }
 0xe28   : > { %v2015_v51 = vmul.f32 1.442695, %v2008_v50  ;;  %v2895_v50 = vld [vmem:[%s4192_s7 + $0x78] sm:$0xff] }
 0xe2a   : > { %3290 = vpow2.f32 %v2015_v51  ;;  %v2894_v51 = vld [vmem:[%s4192_s7 + $0x70] sm:$0xff] }
 0xe33   : > { %v3287_v52 = vpop.eup %3286 }
 0xe34   : > { %v3289_v53 = vpop.eup %3288  ;;  %v2020_v54 = vsel %vm604_vm2, %v3287_v52, 0.0 }
 0xe35   : > { %2021 = vadd.xlane.f32.xlu0 %v2020_v54  ;;  %v2023_v57 = vsel %vm604_vm2, %v3289_v53, 0.0  ;;  %v2891_v54 = vld [vmem:[%s4192_s7 + $0x58] sm:$0xff] }
 0xe36   : > { %2024 = vadd.xlane.f32.xlu1 %v2023_v57 }
 0xe37   : > { %v3291_v58 = vpop.eup %3290 }
 0xe38   : > { %v2026_v59 = vsel %vm604_vm2, %v3291_v58, 0.0 }
 0xe39   : > { %2027 = vadd.xlane.f32.xlu0 %v2026_v59 }
 0xe47   : > { %2189 = vrot.lane.b32.xlu1 %v3952_v20, %s3442_s27 }
 0xe4b   : > { %2265 = vrot.lane.b32.xlu1 %v3960_v0, %s3442_s27 }
 0xe4f   : > { %2113 = vrot.lane.b32.xlu0 %v3954_v4, %s3442_s27  ;;  %s3364_s27 = scalar_lea.vmem %s2753_s18, 128 }
 0xe50   : > { %p3365_p13 = scmp.ne.s32.totalorder %s2753_s18, %s3364_s27 }
 0xe52   : > { %p3366_p7 = pnand %p3365_p13, %p4232_p3 }
 0xe54   : > { %p3367_p8 = pneg %p3366_p7 }
 0xe56   : > { %v2019_v60 = vpop.xlane.xlu1 %2018 }
 0xe57   : > { %3292 = vrcp.f32 %v2019_v60  ;;  %v2448_v60 = vrot.slane %v3935_v56, %v1371_v19  ;;  %v2889_v19 = vld [vmem:[%s4192_s7 + $0x48] sm:$0xff] }
 0xe64   : > { %v3293_v61 = vpop.eup %3292 }
 0xe65   : > { %v2030_v62 = vmul.f32 %v3293_v61, %v3285_v41 }
 0xe67   : > { %3132 = vmatmul.mubr.msk.f32.vlgmr.msra.gmra.mxu0 %vm604_vm2, %v2030_v62  ;;  %v2456_v62 = vrot.slane %v3935_v56, %v1379_v22  ;;  %v2888_v22 = vld [vmem:[%s4192_s7 + $0x40] sm:$0xff] }
 0xe68   : > { %3141 = vmatprep.mubr.msk.f32.mxu0 %vm3437_vm1, %v3436_v8 }
 0xebe   : > { %v2022_v63 = vpop.xlane.xlu0 %2021 }
 0xebf   : > { %v2025_v1 = vpop.xlane.xlu1 %2024  ;;  %3294 = vrcp.f32 %v2022_v63 }
 0xec0   : > { %3296 = vrcp.f32 %v2025_v1 }
 0xec2   : > { %v2028_v2 = vpop.xlane.xlu0 %2027 }
 0xec3   : > { %v2190_v3 = vpop.permute.xlu1 %2189  ;;  %3298 = vrcp.f32 %v2028_v2 }
 0xec4   : > { %3140 = vmatpush3.msra.mxu0 %v2190_v3  ;;  %v2890_v3 = vld [vmem:[%s4192_s7 + $0x50] sm:$0xff] }
 0xec5   : > { %3149 = vmatprep.subr.mxu0 %v3436_v8 }
 0xec6   : > { %v2114_v20 = vpop.permute.xlu0 %2113 }
 0xec7   : > { %3135 = vmatpush3.msra.mxu1 %v2114_v20  ;;  %v2266_v7 = vpop.permute.xlu1 %2265  ;;  %v2912_v20 = vld [vmem:[%s4191_s6 + $0x1] ss:$0 sm:$0xff] }
 0xec8   : > { %3144 = vmatprep.subr.mxu1 %v3436_v8 }
 0xecc   : > { %v3295_v4 = vpop.eup %3294 }
 0xecd   : > { %v3297_v0 = vpop.eup %3296  ;;  %v2032_v5 = vmul.f32 %v3295_v4, %v3287_v52  ;;  %v2893_v52 = vld [vmem:[%s4192_s7 + $0x68] sm:$0xff] }
 0xece   : > { %v2034_v6 = vmul.f32 %v3297_v0, %v3289_v53  ;;  %v2892_v53 = vld [vmem:[%s4192_s7 + $0x60] sm:$0xff] }
 0xecf   : > { %3137 = vmatmul.mubr.msk.f32.vlgmr.msra.gmra.mxu1 %vm604_vm2, %v2032_v5 }
 0xed0   : > { %v3299_v9 = vpop.eup %3298  ;;  %3142 = vmatmul.mubr.msk.f32.vlgmr.msra.gmra.mxu0 %vm604_vm2, %v2034_v6  ;;  %3145 = vmatpush3.msra.mxu1 %v2266_v7  ;;  %v2615_v7 = vrot.slane %v3935_v56, %v1539_v36  ;;  %v2643_v36 = vld [vmem:[%s4195_s10 + $0x10] sm:$0xff]  ;;  %v2642_v56 = vld [vmem:[%s4195_s10 + $0x8] sm:$0xff] }
 0xed1   : > { %3146 = vmatprep.mubr.msk.f32.mxu1 %vm3437_vm1, %v3436_v8  ;;  %v2036_v10 = vmul.f32 %v3299_v9, %v3291_v58  ;;  %3157 = vmatprep.mubr.msk.f32.mxu0 %vm3437_vm1, %v3436_v8 }
 0xed2   : > { %3160 = vmatprep.subr.mxu1 %v3436_v8  ;;  %3150 = vmatpush3.msra.mxu0 %v2882_v11 }
 0xed3   : > { %3147 = vmatmul.mubr.msk.f32.vlgmr.msra.gmra.mxu1 %vm604_vm2, %v2036_v10  ;;  %3151 = vmatprep.subr.mxu0 %v3436_v8 }
 0xed4   : > { %3168 = vmatprep.mubr.msk.f32.mxu1 %vm3437_vm1, %v3436_v8  ;;  %3152 = vmatpush3.msra.mxu0 %v2881_v14 }
 0xed5   : > { %3153 = vmatprep.subr.mxu0 %v3436_v8  ;;  %3161 = vmatpush3.msra.mxu1 %v2886_v18 }
 0xed6   : > { %3154 = vmatpush3.msra.mxu0 %v2880_v15  ;;  %3162 = vmatprep.subr.mxu1 %v3436_v8 }
 0xed7   : > { %3155 = vmatprep.subr.mxu0 %v3436_v8 }
 0xed8   : > { %3156 = vmatpush3.msra.mxu0 %v2879_v21 }
 0xed9   : > { %3171 = vmatprep.subr.mxu0 %v3436_v8 }
 0xf27   : > { %v2109_v12 = vpop.f32.mrf.mxu0 }
 0xf29   : > { %v3133_v13 = vpop.f32.mrf.mxu0 }
 0xf8f   : > { %v2185_v23 = vpop.f32.mrf.mxu1 }
 0xf90   : > { %v2261_v24 = vpop.f32.mrf.mxu0  ;;  %2342 = vrot.lane.b32.xlu0 %v2185_v23, %s4229_s0 }
 0xf91   : > { %2346 = vrot.lane.b32.xlu1 %v2261_v24, %s4230_s16  ;;  %v3138_v25 = vpop.f32.mrf.mxu1 }
 0xf92   : > { %v3143_v26 = vpop.f32.mrf.mxu0  ;;  %v2641_v25 = vld [vmem:[%s4195_s10] sm:$0xff] }
 0xf93   : > { %v2337_v27 = vpop.f32.mrf.mxu1 }
 0xf94   : > { %2350 = vrot.lane.b32.xlu0 %v2337_v27, %s4231_s17  ;;  %s2918_s17 = sshll.u32 %s3533_s25, 7  ;;  %s3370_s25 = scalar_lea.vmem %s3369_s23, 256 }
 0xf95   : > { %v3148_v28 = vpop.f32.mrf.mxu1  ;;  %s2750_s14 = scalar_lea.hbm %s4197_s12, %s2918_s17  ;;  %p3372_p2 = scmp.lt.s32.totalorder %s3370_s25, %s3364_s27 }
 0xf97   : > { %p3373_p4 = por %p3372_p2, %p3371_p10 }
 0xf99   : > { %p3374_p5 = pnand %p3373_p4, %p3367_p8 }
0x1002   : > { %v2343_v29 = vpop.permute.xlu0 %2342 }
0x1003   : > { %v2353_v30 = vsel %vm604_vm2, %v2109_v12, %v2343_v29  ;;  %v2347_v31 = vpop.permute.xlu1 %2346  ;;  %v2617_v29 = vld [vmem:[%s4194_s9] sm:$0x3] }
0x1004   : > { %v2354_v32 = vsel %vm1276_vm3, %v2353_v30, %v2347_v31  ;;  %v2631_v30 = vrot.slane %v2617_v29, %v3829_v55  ;;  %v2639_v31 = vrot.slane %v2617_v29, %v3706_v17 }
0x1006   : > { %v2351_v33 = vpop.permute.xlu0 %2350 }
0x1007   : > { %v2355_v34 = vsel %vm1278_vm4, %v2354_v32, %v2351_v33 }
0x1008   : > { %3158 = vmatmul.mubr.msk.f32.vlgmr.msra.gmra.mxu0 %vm491_vm0, %v2355_v34 }
0x1009   : > { %3187 = vmatprep.mubr.msk.f32.mxu0 %vm3437_vm1, %v3436_v8  ;;  %3172 = vmatpush3.msra.mxu0 %v2895_v50 }
0x100a   : > { %3173 = vmatprep.subr.mxu0 %v3436_v8 }
0x100b   : > { %3174 = vmatpush3.msra.mxu0 %v2894_v51 }
0x100c   : > { %3175 = vmatprep.subr.mxu0 %v3436_v8 }
0x100d   : > { %3176 = vmatpush3.msra.mxu0 %v2893_v52 }
0x100e   : > { %3177 = vmatprep.subr.mxu0 %v3436_v8 }
0x100f   : > { %3178 = vmatpush3.msra.mxu0 %v2892_v53 }
0x1010   : > { %3179 = vmatprep.subr.mxu0 %v3436_v8 }
0x1011   : > { %3180 = vmatpush3.msra.mxu0 %v2891_v54 }
0x1012   : > { %3181 = vmatprep.subr.mxu0 %v3436_v8 }
0x1013   : > { %3182 = vmatpush3.msra.mxu0 %v2890_v3 }
0x1014   : > { %3183 = vmatprep.subr.mxu0 %v3436_v8 }
0x1015   : > { %3184 = vmatpush3.msra.mxu0 %v2889_v19 }
0x1016   : > { %3185 = vmatprep.subr.mxu0 %v3436_v8 }
0x1017   : > { %3186 = vmatpush3.msra.mxu0 %v2888_v22 }
0x10c8   : > { %v2425_v37 = vpop.f32.mrf.mxu0 }
0x10c9   : > { %v2429_v39 = vadd.f32 %v2425_v37, %v3910_v42  ;;  %v2885_v42 = vld [vmem:[%s4190_s5 + $0x30] sm:$0xff] }
0x10ca   : > { %v3159_v40 = vpop.f32.mrf.mxu0  ;;  %3163 = vmatpush3.msra.mxu1 %v2885_v42 }
0x10cb   : > { %v4050_v41 = vadd.f32 %v2433_v35, %v2429_v39  ;;  %3164 = vmatprep.subr.mxu1 %v3436_v8 }
0x10cc   : > { %3165 = vmatpush3.msra.mxu1 %v2884_v38 }
0x10cd   : > { %v2435_v43 = vsel %vm491_vm0, %v4050_v41, 0.0  ;;  %3166 = vmatprep.subr.mxu1 %v3436_v8 }
0x10ce   : > { %2436 = vadd.xlane.f32.xlu1 %v2435_v43  ;;  %3167 = vmatpush3.msra.mxu1 %v2883_v49 }
0x10cf   : > { %3190 = vmatprep.subr.mxu1 %v3436_v8 }
0x1157   : > { %v2437_v44 = vpop.xlane.xlu1 %2436 }
0x1158   : > { %v2438_v45 = vmul.f32 0.03125, %v2437_v44 }
0x115a   : > { %v2439_v46 = vsub.f32 %v4050_v41, %v2438_v45 }
0x115c   : > { %v2440_v47 = vmul.f32 %v2439_v46, %v2439_v46  ;;  %v2449_v61 = vmul.f32 %v2448_v60, %v2439_v46 }
0x115e   : > { %v2441_v48 = vsel %vm491_vm0, %v2440_v47, 0.0 }
0x115f   : > { %2442 = vadd.xlane.f32.xlu0 %v2441_v48 }
0x11e8   : > { %v2443_v57 = vpop.xlane.xlu0 %2442 }
0x11e9   : > { %v2444_v58 = vmul.f32 0.03125, %v2443_v57 }
0x11eb   : > { %v2450_v59 = vadd.f32 1e-06, %v2444_v58 }
0x11ed   : > { %3300 = vrsqrt.f32 %v2450_v59 }
0x11fa   : > { %v3301_v63 = vpop.eup %3300 }
0x11fb   : > { %v2452_v1 = vmul.f32 %v3301_v63, %v2449_v61 }
0x11fd   : > { %v2457_v2 = vadd.f32 %v2456_v62, %v2452_v1 }
0x11ff   : > { %3169 = vmatmul.mubr.msk.f32.vlgmr.msra.gmra.mxu1 %vm491_vm0, %v2457_v2 }
0x1200   : > { %3198 = vmatprep.mubr.msk.f32.mxu1 %vm3437_vm1, %v3436_v8  ;;  %3191 = vmatpush3.msra.mxu1 %v2644_v16 }
0x1201   : > { %3192 = vmatprep.subr.mxu1 %v3436_v8 }
0x1202   : > { %3193 = vmatpush3.msra.mxu1 %v2643_v36 }
0x1203   : > { %3194 = vmatprep.subr.mxu1 %v3436_v8 }
0x1204   : > { %3195 = vmatpush3.msra.mxu1 %v2642_v56 }
0x1205   : > { %3196 = vmatprep.subr.mxu1 %v3436_v8  ;;  %v2915_v8 = vld [vmem:[%s4196_s11] ss:$0 sm:$0xff] }
0x1206   : > { %3197 = vmatpush3.msra.mxu1 %v2641_v25 }
0x12bf   : > { %v2533_v4 = vpop.f32.mrf.mxu1 }
0x12c0   : > { %v2534_v0 = vadd.f32 %v2912_v20, %v2533_v4 }
0x12c1   : > { %v3170_v5 = vpop.f32.mrf.mxu1 }
0x12c2   : > { %v2537_v6 = vmax.f32 %v2534_v0, 0.0 }
0x12c4   : > { %3188 = vmatmul.mubr.msk.f32.vlgmr.msra.gmra.mxu0 %vm1462_vm5, %v2537_v6 }
0x1384   : > { %v2607_v9 = vpop.f32.mrf.mxu0 }
0x1385   : > { %v2611_v10 = vadd.f32 %v2607_v9, %v4050_v41 }
0x1386   : > { %v3189_v11 = vpop.f32.mrf.mxu0 }
0x1387   : > { %v2616_v12 = vadd.f32 %v2615_v7, %v2611_v10 }
0x1389   : > { %v2618_v13 = vsel %vm491_vm0, %v2616_v12, 0.0 }
0x138a   : > { %2619 = vadd.xlane.f32.xlu0 %v2618_v13 }
0x1413   : > { %v2620_v14 = vpop.xlane.xlu0 %2619 }
0x1414   : > { %v2621_v15 = vmul.f32 0.03125, %v2620_v14 }
0x1416   : > { %v2622_v21 = vsub.f32 %v2616_v12, %v2621_v15 }
0x1418   : > { %v2623_v23 = vmul.f32 %v2622_v21, %v2622_v21  ;;  %v2632_v32 = vmul.f32 %v2631_v30, %v2622_v21 }
0x141a   : > { %v2624_v24 = vsel %vm491_vm0, %v2623_v23, 0.0 }
0x141b   : > { %2625 = vadd.xlane.f32.xlu1 %v2624_v24 }
0x14a4   : > { %v2626_v26 = vpop.xlane.xlu1 %2625 }
0x14a5   : > { %v2627_v27 = vmul.f32 0.03125, %v2626_v26 }
0x14a7   : > { %v2633_v28 = vadd.f32 1e-06, %v2627_v27 }
0x14a9   : > { %3302 = vrsqrt.f32 %v2633_v28 }
0x14b6   : > { %v3303_v33 = vpop.eup %3302 }
0x14b7   : > { %v2635_v34 = vmul.f32 %v3303_v33, %v2632_v32 }
0x14b9   : > { %v2640_v35 = vadd.f32 %v2639_v31, %v2635_v34 }
0x14bb   : > { %3199 = vmatmul.mubr.msk.f32.vlgmr.msra.gmra.mxu1 %vm491_vm0, %v2640_v35 }
0x157b   : > { %v2721_v37 = vpop.f32.mrf.mxu1 }
0x157c   : > { %v2722_v39 = vadd.f32 %v2915_v8, %v2721_v37 }
0x157d   : > { %v3200_v40 = vpop.f32.mrf.mxu1 }
0x157e   : > { %v2725_v41 = vsel %vm1276_vm3, %v2722_v39, -inf }
0x157f   : > { %2726 = vmax.xlane.f32.xlu0 %v2725_v41 }
0x1608   : > { %v2727_v55 = vpop.xlane.xlu0 %2726 }
0x1609   : > { %v2728_v17 = vsub.f32 %v2722_v39, %v2727_v55 }
0x160b   : > { %v2729_v43 = vmul.f32 1.442695, %v2728_v17 }
0x160d   : > { %3304 = vpow2.f32 %v2729_v43 }
0x161a   : > { %v3305_v44 = vpop.eup %3304 }
0x161b   : > { %v2731_v45 = vsel %vm1276_vm3, %v3305_v44, 0.0 }
0x161c   : > { %2732 = vadd.xlane.f32.xlu1 %v2731_v45 }
0x16a5   : > { %v2733_v46 = vpop.xlane.xlu1 %2732 }
0x16a6   : > { %3306 = vlog2.f32 %v2733_v46 }
0x16b3   : > { %v3307_v47 = vpop.eup %3306 }
0x16b4   : > { %v2735_v48 = vmul.f32 0.6931472, %v3307_v47 }
0x16b6   : > { %v2736_v18 = vsub.f32 %v2728_v17, %v2735_v48 }
0x16b8   : > { %2737 = vst.msk [vmem:[%s465_s21] sm:$0xff] %vm1276_vm3, %v2736_v18 }
0x16b9   : > { %3377 = shalt.err (!%p3374_p5)
}
0x16ba   : > { %s3378_s20 = scalar_lea.hbm %s2750_s14, 128  ;;  %s3382_s0 = scalar_lea.hbm %s4197_s12, 256 }
0x16bb   : > { %p3379_p9 = scmp.ne.s32.totalorder %s2750_s14, %s3378_s20  ;;  %p3383_p12 = scmp.lt.s32.totalorder %s2750_s14, %s4197_s12 }
0x16bc   : > { %p3384_p1 = scmp.lt.s32.totalorder %s3382_s0, %s3378_s20 }
0x16bd   : > { %p3380_p0 = pnand %p3379_p9, %p4232_p3 }
0x16be   : > { %p3385_p6 = por %p3384_p1, %p3383_p12 }
0x16bf   : > { %p3381_p11 = pneg %p3380_p0 }
0x16c1   : > { %p3386_p13 = pnand %p3385_p6, %p3381_p11 }
0x16c3   : > { %3389 = shalt.err (!%p3386_p13)
}
0x16c4   : > { %3205 = dma.vmem_to_hbm [thread:$0]  (%p4232_p3), %s2753_s18, 128, %s2750_s14, %s2739_s30  }
0x16c5 PF: > { %s4233_s21 = sld [smem:[#allocation11_spill]]  ;;  %p4236_p8 = scmp.ge.s32.totalorder %s3432_s24, 2 }
0x16c6   : > { %s4234_s19 = sld [smem:[#allocation15_spill]] }
0x16cb   : > { %s2764_s29 = sand.u32 1, %s4233_s21  }
0x16cc   : > { %p4235_p7 = scmp.ne.s32.totalorder %s4234_s19, 0  ;;  %s2765_s27 = scalar_lea.sflag [#allocation4], %s2764_s29 }
0x16ce   : > { %p3215_p10 = pnand %p4236_p8, %p4235_p7 }
0x16d0   : > { %p3216_p2 = pneg %p3215_p10 }
0x16d2   : > { %3415 = dma.done.wait (%p3216_p2), %s2765_s27, 128  }
0x16d3   : > { %3417 = vsyncadd (%p3216_p2), %s2765_s27, 4294967168  ;;  %s4237_s24 = sld [smem:[#allocation13_spill]]  ;;  %s4240_s21 = smov %s3424_s22 }
0x16d4   : > { %s4238_s26 = sld [smem:[#allocation12_spill]] }
0x16d5   : > { %s4239_s23 = sld [smem:[#allocation14_spill]] }
0x16d9   : > { %p28_p4 = scmp.ge.s32.totalorder %s4237_s24, 4  }
0x16da   : > { %s4241_s22 = smov %s4238_s26 }
0x16db   :  { %30 = sbr.rel (!%p28_p4) target bundleno = 9 (0x9), region = 133 }
0x16e0   :  { %2770 = vsyncpa [#allocation3], 1 }
0x16e1   :  { %2772 = vsyncpa [#allocation3 + $0x1], 1 }
0x16e2   :  { %2773 = vsyncpa [#allocation6], 1 }
0x16e3   :  { %2775 = vsyncpa [#allocation6 + $0x1], 1 }
0x16e4   :  { %2776 = vsyncpa [#allocation4], 1 }
0x16e5   :  { %2778 = vsyncpa [#allocation4 + $0x1], 1 }

</bundles_post_ra>
